<compile_context>
chip_gen: v7x
topology: tpu7x:2x2x1
jax: 0.10.0
libtpu: 0.0.40
codegen_flags: <defaults>
</compile_context>

<pallas_src>
import functools

import jax
import jax.numpy as jnp
from jax import lax
from jax.experimental import pallas as pl
from jax.experimental.pallas import tpu as pltpu


# ----------------------------------------------------------------------------
# Fused kernel: conv1+pool1 (VPU) -> conv2 (MXU im2col) -> pool2 -> MLP head
# ----------------------------------------------------------------------------
def fused_cnn_kernel(x_ref, w1_ref, b1_ref, w2_ref, b2_ref,
                     wf1_ref, bf1_ref, wf2_ref, bf2_ref, o_ref,
                     *, L2, L4, Bt):
    f32 = jnp.float32
    cdt = w2_ref.dtype  # matmul compute dtype (bf16)

    # ---- conv1 (Cin=1, k=3, pad=1) + ReLU + maxpool(2), all on the VPU -----
    # x_ref: (Bt, L2, 2) where [:, i, 0] = x[2i], [:, i, 1] = x[2i+1]
    x = x_ref[...].astype(f32)
    xe = x[:, :, 0:1]                                   # x[2i]    (Bt, L2, 1)
    xo = x[:, :, 1:2]                                   # x[2i+1]  (Bt, L2, 1)
    z1 = jnp.zeros((Bt, 1, 1), f32)
    xo_m1 = jnp.concatenate([z1, xo[:, :L2 - 1, :]], axis=1)   # x[2i-1] (0-pad)
    xe_p1 = jnp.concatenate([xe[:, 1:, :], z1], axis=1)        # x[2i+2] (0-pad)

    w1 = w1_ref[...].astype(f32)                        # (3, 1, 32)
    h_even = xo_m1 * w1[0] + xe * w1[1] + xo * w1[2]    # conv1 at position 2i
    h_odd = xe * w1[0] + xo * w1[1] + xe_p1 * w1[2]     # conv1 at position 2i+1
    # pool(relu(h+b)) == relu(max(h_even, h_odd) + b)   (monotone ops)
    p1 = jnp.maximum(jnp.maximum(h_even, h_odd) + b1_ref[...], 0.0)  # (Bt,L2,32)

    # ---- conv2 (32->64, k=3, pad=1) as ONE im2col matmul on the MXU --------
    z32 = jnp.zeros((Bt, 1, 32), f32)
    p1_m1 = jnp.concatenate([z32, p1[:, :L2 - 1, :]], axis=1)  # p1[l-1]
    p1_p1 = jnp.concatenate([p1[:, 1:, :], z32], axis=1)       # p1[l+1]
    col = jnp.concatenate([p1_m1, p1, p1_p1], axis=-1)         # (Bt, L2, 96)
    col2 = col.reshape(Bt * L2, 96).astype(cdt)
    h2 = jnp.dot(col2, w2_ref[...], preferred_element_type=f32)  # (Bt*L2, 64)
    h2 = jnp.maximum(h2 + b2_ref[...], 0.0)
    h2 = h2.reshape(Bt, L2, 64)

    # ---- maxpool(2) + flatten, fully in registers --------------------------
    # Flatten order is position-major (l*64 + c); wf1's rows were permuted at
    # prep time to fold PyTorch's NCL channel-major flatten into the weights.
    pieces = [jnp.maximum(h2[:, 2 * j, :], h2[:, 2 * j + 1, :])
              for j in range(L4)]
    flat = jnp.concatenate(pieces, axis=-1)                     # (Bt, 64*L4)

    # ---- fused MLP head: relu(flat @ Wf1 + b) @ Wf2 + b ---------------------
    h3 = jnp.dot(flat.astype(cdt), wf1_ref[...], preferred_element_type=f32)
    h3 = jnp.maximum(h3 + bf1_ref[...], 0.0)                    # (Bt, 1024)
    out = jnp.dot(h3.astype(cdt), wf2_ref[...], preferred_element_type=f32)
    out = out + bf2_ref[...]                                    # (Bt, C)
    o_ref[...] = out.reshape(Bt, 1, out.shape[-1]).astype(o_ref.dtype)


# ----------------------------------------------------------------------------
# One-time parameter preparation (layout folding / padding / bf16 cast)
# ----------------------------------------------------------------------------
def prepare_params(p, input_size, compute_dtype=jnp.bfloat16):
    L4 = input_size // 4
    feat = 64 * L4
    H = p["wf1"].shape[1]                       # 1000
    Hp = ((H + 127) // 128) * 128               # 1024 (lane-dense hidden dim)

    # conv2 taps stacked tap-major to match the kernel's im2col concat order.
    w2cat = p["w2"].reshape(3 * 32, 64).astype(compute_dtype)

    # Fold PyTorch's NCL channel-major flatten (row index c*L4 + l) into wf1's
    # row order so the kernel's position-major flatten (l*64 + c) is free.
    wf1 = p["wf1"].reshape(64, L4, H).transpose(1, 0, 2).reshape(feat, H)
    wf1 = jnp.pad(wf1, ((0, 0), (0, Hp - H))).astype(compute_dtype)
    bf1 = jnp.pad(p["bf1"], ((0, 0), (0, Hp - H)))
    wf2 = jnp.pad(p["wf2"], ((0, Hp - H), (0, 0))).astype(compute_dtype)

    return {"w1": p["w1"], "b1": p["b1"], "w2cat": w2cat, "b2": p["b2"],
            "wf1p": wf1, "bf1p": bf1, "wf2p": wf2, "bf2": p["bf2"]}


# ----------------------------------------------------------------------------
# Forward pass wrapper (single pallas_call)
# ----------------------------------------------------------------------------
def cnn_forward(x, prep, block_b=None):
    B, L = x.shape
    assert L % 4 == 0, "input_size must be divisible by 4 (two maxpool(2))"
    L2, L4 = L // 2, L // 4
    C = prep["wf2p"].shape[1]

    # Batch tile: amortize per-step overhead but keep >=2 grid steps (v7x TCs).
    Bt = block_b if block_b is not None else min(8, max(1, B // 2))
    Bp = pl.cdiv(B, Bt) * Bt
    xw = jnp.pad(x, ((0, Bp - B), (0, 0))) if Bp != B else x
    # Free even/odd de-interleave of the conv input: (Bp, L) -> (Bp, L/2, 2).
    x3 = xw.reshape(Bp, L2, 2)

    kernel = functools.partial(fused_cnn_kernel, L2=L2, L4=L4, Bt=Bt)
    out = pl.pallas_call(
        kernel,
        out_shape=jax.ShapeDtypeStruct((Bp, 1, C), x.dtype),
        grid_spec=pltpu.PrefetchScalarGridSpec(
            num_scalar_prefetch=0,
            grid=(Bp // Bt,),
            in_specs=[
                pl.BlockSpec((Bt, L2, 2), lambda bi: (bi, 0, 0)),
                pl.BlockSpec((3, 1, 32), lambda bi: (0, 0, 0)),
                pl.BlockSpec((1, 32), lambda bi: (0, 0)),
                pl.BlockSpec((96, 64), lambda bi: (0, 0)),
                pl.BlockSpec((1, 64), lambda bi: (0, 0)),
                pl.BlockSpec(prep["wf1p"].shape, lambda bi: (0, 0)),
                pl.BlockSpec(prep["bf1p"].shape, lambda bi: (0, 0)),
                pl.BlockSpec(prep["wf2p"].shape, lambda bi: (0, 0)),
                pl.BlockSpec(prep["bf2"].shape, lambda bi: (0, 0)),
            ],
            out_specs=pl.BlockSpec((Bt, 1, C), lambda bi: (bi, 0, 0)),
        ),
        compiler_params=pltpu.CompilerParams(
            dimension_semantics=("parallel",)),
    )(x3, prep["w1"], prep["b1"], prep["w2cat"], prep["b2"],
      prep["wf1p"], prep["bf1p"], prep["wf2p"], prep["bf2"])
    return out[:B, 0, :]


# ----------------------------------------------------------------------------
# Deterministic synthetic parameters (PyTorch-style uniform bounds)
# ----------------------------------------------------------------------------
def init_params(key, input_size, num_classes):
    ks = jax.random.split(key, 8)

    def u(k, shape, fan_in):
        bound = 1.0 / jnp.sqrt(jnp.float32(fan_in))
        return jax.random.uniform(k, shape, jnp.float32, -bound, bound)

    feat = 64 * (input_size // 4)
    return {
        "w1": u(ks[0], (3, 1, 32), 1 * 3),       # (K, Cin, Cout)
        "b1": u(ks[1], (1, 32), 1 * 3),
        "w2": u(ks[2], (3, 32, 64), 32 * 3),
        "b2": u(ks[3], (1, 64), 32 * 3),
        "wf1": u(ks[4], (feat, 1000), feat),     # PyTorch NCL-flatten row order
        "bf1": u(ks[5], (1, 1000), feat),
        "wf2": u(ks[6], (1000, num_classes), 1000),
        "bf2": u(ks[7], (1, num_classes), 1000),
    }


# ----------------------------------------------------------------------------
# Pure-JAX f32 reference (mirrors PyTorch NCL semantics) for validation
# ----------------------------------------------------------------------------
def reference_forward(x, p):
    B, L = x.shape
    h = x[:, None, :]  # (B, 1, L) NCL

    def conv(h, w, b):  # w: (K, Cin, Cout) -> OIH (Cout, Cin, K)
        w_oih = jnp.transpose(w, (2, 1, 0))
        y = lax.conv_general_dilated(h, w_oih, (1,), [(1, 1)],
                                     dimension_numbers=("NCH", "OIH", "NCH"))
        return y + b.reshape(1, -1, 1)

    def pool(h):
        Bb, Cc, Ll = h.shape
        return jnp.max(h.reshape(Bb, Cc, Ll // 2, 2), axis=-1)

    h = pool(jnp.maximum(conv(h, p["w1"], p["b1"]), 0.0))
    h = pool(jnp.maximum(conv(h, p["w2"], p["b2"]), 0.0))
    h = h.reshape(B, -1)                                   # NCL channel-major
    h = jnp.maximum(h @ p["wf1"] + p["bf1"], 0.0)
    return h @ p["wf2"] + p["bf2"]


if __name__ == "__main__":
    key = jax.random.PRNGKey(0)
    kx, kp = jax.random.split(key)

    batch, input_size, num_classes = 2, 16, 4
    x = jax.random.normal(kx, (batch, input_size), jnp.float32)
    params = init_params(kp, input_size, num_classes)
    prep = prepare_params(params, input_size)

    fwd = jax.jit(cnn_forward)
    out = jax.block_until_ready(fwd(x, prep))
    ref = reference_forward(x, params)

    assert out.shape == (batch, num_classes), out.shape
    # bf16 matmul operands with f32 accumulation vs f32 reference.
    assert jnp.allclose(out, ref, atol=1e-2, rtol=1e-2), (
        "Pallas vs reference mismatch, max abs diff = %g"
        % float(jnp.max(jnp.abs(out - ref))))
    print("KERNEL_OK")
</pallas_src>

<mosaic_0001>
module attributes {stable_mosaic.version = 11 : i64} {
  func.func @fused_cnn_kernel(%arg0: i32, %arg1: memref<1x8x2xf32, #tpu.memory_space<vmem>>, %arg2: memref<3x1x32xf32, #tpu.memory_space<vmem>>, %arg3: memref<1x32xf32, #tpu.memory_space<vmem>>, %arg4: memref<96x64xbf16, #tpu.memory_space<vmem>>, %arg5: memref<1x64xf32, #tpu.memory_space<vmem>>, %arg6: memref<256x1024xbf16, #tpu.memory_space<vmem>>, %arg7: memref<1x1024xf32, #tpu.memory_space<vmem>>, %arg8: memref<1024x4xbf16, #tpu.memory_space<vmem>>, %arg9: memref<1x4xf32, #tpu.memory_space<vmem>>, %arg10: memref<1x1x4xf32, #tpu.memory_space<vmem>>) attributes {dimension_semantics = [#tpu.dimension_semantics<parallel>], iteration_bounds = array<i64: 2>, scalar_prefetch = 0 : i64, scratch_operands = 0 : i64, tpu.core_type = #tpu.core_type<tc>, window_params = [{transform_indices = @transform_0, window_bounds = array<i64: 1, 8, 2>}, {pipeline_mode = #tpu.pipeline_mode<synchronous>, transform_indices = @transform_1, window_bounds = array<i64: 3, 1, 32>}, {pipeline_mode = #tpu.pipeline_mode<synchronous>, transform_indices = @transform_2, window_bounds = array<i64: 1, 32>}, {pipeline_mode = #tpu.pipeline_mode<synchronous>, transform_indices = @transform_3, window_bounds = array<i64: 96, 64>}, {pipeline_mode = #tpu.pipeline_mode<synchronous>, transform_indices = @transform_4, window_bounds = array<i64: 1, 64>}, {pipeline_mode = #tpu.pipeline_mode<synchronous>, transform_indices = @transform_5, window_bounds = array<i64: 256, 1024>}, {pipeline_mode = #tpu.pipeline_mode<synchronous>, transform_indices = @transform_6, window_bounds = array<i64: 1, 1024>}, {pipeline_mode = #tpu.pipeline_mode<synchronous>, transform_indices = @transform_7, window_bounds = array<i64: 1024, 4>}, {pipeline_mode = #tpu.pipeline_mode<synchronous>, transform_indices = @transform_8, window_bounds = array<i64: 1, 4>}, {transform_indices = @transform_9, window_bounds = array<i64: 1, 1, 4>}]} {
    %c0 = arith.constant 0 : index
    %c0_0 = arith.constant 0 : index
    %c0_1 = arith.constant 0 : index
    %0 = vector.load %arg1[%c0, %c0_0, %c0_1] : memref<1x8x2xf32, #tpu.memory_space<vmem>>, vector<1x8x2xf32>
    %1 = vector.extract_strided_slice %0 {offsets = [0, 0, 0], sizes = [1, 8, 1], strides = [1, 1, 1]} : vector<1x8x2xf32> to vector<1x8x1xf32>
    %2 = vector.extract_strided_slice %0 {offsets = [0, 0, 1], sizes = [1, 8, 1], strides = [1, 1, 1]} : vector<1x8x2xf32> to vector<1x8x1xf32>
    %cst = arith.constant 0.000000e+00 : f32
    %3 = vector.broadcast %cst : f32 to vector<1x1x1xf32>
    %4 = vector.extract_strided_slice %2 {offsets = [0, 0, 0], sizes = [1, 7, 1], strides = [1, 1, 1]} : vector<1x8x1xf32> to vector<1x7x1xf32>
    %5 = tpu.concatenate %3, %4 in 1 : vector<1x1x1xf32>, vector<1x7x1xf32> -> vector<1x8x1xf32>
    %6 = vector.extract_strided_slice %1 {offsets = [0, 1, 0], sizes = [1, 7, 1], strides = [1, 1, 1]} : vector<1x8x1xf32> to vector<1x7x1xf32>
    %7 = tpu.concatenate %6, %3 in 1 : vector<1x7x1xf32>, vector<1x1x1xf32> -> vector<1x8x1xf32>
    %c0_2 = arith.constant 0 : index
    %c0_3 = arith.constant 0 : index
    %c0_4 = arith.constant 0 : index
    %8 = vector.load %arg2[%c0_2, %c0_3, %c0_4] : memref<3x1x32xf32, #tpu.memory_space<vmem>>, vector<3x1x32xf32>
    %9 = vector.extract_strided_slice %8 {offsets = [0, 0, 0], sizes = [1, 1, 32], strides = [1, 1, 1]} : vector<3x1x32xf32> to vector<1x1x32xf32>
    %10 = vector.shape_cast %9 : vector<1x1x32xf32> to vector<1x32xf32>
    %11 = vector.shape_cast %10 : vector<1x32xf32> to vector<1x1x32xf32>
    %12 = vector.broadcast %5 : vector<1x8x1xf32> to vector<1x8x32xf32>
    %13 = vector.broadcast %11 : vector<1x1x32xf32> to vector<1x8x32xf32>
    %14 = arith.mulf %12, %13 : vector<1x8x32xf32>
    %15 = vector.extract_strided_slice %8 {offsets = [1, 0, 0], sizes = [1, 1, 32], strides = [1, 1, 1]} : vector<3x1x32xf32> to vector<1x1x32xf32>
    %16 = vector.shape_cast %15 : vector<1x1x32xf32> to vector<1x32xf32>
    %17 = vector.shape_cast %16 : vector<1x32xf32> to vector<1x1x32xf32>
    %18 = vector.broadcast %1 : vector<1x8x1xf32> to vector<1x8x32xf32>
    %19 = vector.broadcast %17 : vector<1x1x32xf32> to vector<1x8x32xf32>
    %20 = arith.mulf %18, %19 : vector<1x8x32xf32>
    %21 = arith.addf %14, %20 : vector<1x8x32xf32>
    %22 = vector.extract_strided_slice %8 {offsets = [2, 0, 0], sizes = [1, 1, 32], strides = [1, 1, 1]} : vector<3x1x32xf32> to vector<1x1x32xf32>
    %23 = vector.shape_cast %22 : vector<1x1x32xf32> to vector<1x32xf32>
    %24 = vector.shape_cast %23 : vector<1x32xf32> to vector<1x1x32xf32>
    %25 = vector.broadcast %2 : vector<1x8x1xf32> to vector<1x8x32xf32>
    %26 = vector.broadcast %24 : vector<1x1x32xf32> to vector<1x8x32xf32>
    %27 = arith.mulf %25, %26 : vector<1x8x32xf32>
    %28 = arith.addf %21, %27 : vector<1x8x32xf32>
    %29 = vector.extract_strided_slice %8 {offsets = [0, 0, 0], sizes = [1, 1, 32], strides = [1, 1, 1]} : vector<3x1x32xf32> to vector<1x1x32xf32>
    %30 = vector.shape_cast %29 : vector<1x1x32xf32> to vector<1x32xf32>
    %31 = vector.shape_cast %30 : vector<1x32xf32> to vector<1x1x32xf32>
    %32 = vector.broadcast %1 : vector<1x8x1xf32> to vector<1x8x32xf32>
    %33 = vector.broadcast %31 : vector<1x1x32xf32> to vector<1x8x32xf32>
    %34 = arith.mulf %32, %33 : vector<1x8x32xf32>
    %35 = vector.extract_strided_slice %8 {offsets = [1, 0, 0], sizes = [1, 1, 32], strides = [1, 1, 1]} : vector<3x1x32xf32> to vector<1x1x32xf32>
    %36 = vector.shape_cast %35 : vector<1x1x32xf32> to vector<1x32xf32>
    %37 = vector.shape_cast %36 : vector<1x32xf32> to vector<1x1x32xf32>
    %38 = vector.broadcast %2 : vector<1x8x1xf32> to vector<1x8x32xf32>
    %39 = vector.broadcast %37 : vector<1x1x32xf32> to vector<1x8x32xf32>
    %40 = arith.mulf %38, %39 : vector<1x8x32xf32>
    %41 = arith.addf %34, %40 : vector<1x8x32xf32>
    %42 = vector.extract_strided_slice %8 {offsets = [2, 0, 0], sizes = [1, 1, 32], strides = [1, 1, 1]} : vector<3x1x32xf32> to vector<1x1x32xf32>
    %43 = vector.shape_cast %42 : vector<1x1x32xf32> to vector<1x32xf32>
    %44 = vector.shape_cast %43 : vector<1x32xf32> to vector<1x1x32xf32>
    %45 = vector.broadcast %7 : vector<1x8x1xf32> to vector<1x8x32xf32>
    %46 = vector.broadcast %44 : vector<1x1x32xf32> to vector<1x8x32xf32>
    %47 = arith.mulf %45, %46 : vector<1x8x32xf32>
    %48 = arith.addf %41, %47 : vector<1x8x32xf32>
    %49 = arith.maximumf %28, %48 : vector<1x8x32xf32>
    %c0_5 = arith.constant 0 : index
    %c0_6 = arith.constant 0 : index
    %50 = vector.load %arg3[%c0_5, %c0_6] : memref<1x32xf32, #tpu.memory_space<vmem>>, vector<1x32xf32>
    %51 = vector.shape_cast %50 : vector<1x32xf32> to vector<1x1x32xf32>
    %52 = vector.broadcast %51 : vector<1x1x32xf32> to vector<1x8x32xf32>
    %53 = arith.addf %49, %52 : vector<1x8x32xf32>
    %cst_7 = arith.constant 0.000000e+00 : f32
    %54 = vector.broadcast %cst_7 : f32 to vector<1x8x32xf32>
    %55 = arith.maximumf %53, %54 : vector<1x8x32xf32>
    %cst_8 = arith.constant 0.000000e+00 : f32
    %56 = vector.broadcast %cst_8 : f32 to vector<1x1x32xf32>
    %57 = vector.extract_strided_slice %55 {offsets = [0, 0, 0], sizes = [1, 7, 32], strides = [1, 1, 1]} : vector<1x8x32xf32> to vector<1x7x32xf32>
    %58 = tpu.concatenate %56, %57 in 1 : vector<1x1x32xf32>, vector<1x7x32xf32> -> vector<1x8x32xf32>
    %59 = vector.extract_strided_slice %55 {offsets = [0, 1, 0], sizes = [1, 7, 32], strides = [1, 1, 1]} : vector<1x8x32xf32> to vector<1x7x32xf32>
    %60 = tpu.concatenate %59, %56 in 1 : vector<1x7x32xf32>, vector<1x1x32xf32> -> vector<1x8x32xf32>
    %61 = tpu.concatenate %58, %55, %60 in 2 : vector<1x8x32xf32>, vector<1x8x32xf32>, vector<1x8x32xf32> -> vector<1x8x96xf32>
    %62 = vector.shape_cast %61 : vector<1x8x96xf32> to vector<8x96xf32>
    %63 = arith.truncf %62 : vector<8x96xf32> to vector<8x96xbf16>
    %c0_9 = arith.constant 0 : index
    %c0_10 = arith.constant 0 : index
    %64 = vector.load %arg4[%c0_9, %c0_10] : memref<96x64xbf16, #tpu.memory_space<vmem>>, vector<96x64xbf16>
    %cst_11 = arith.constant dense<0.000000e+00> : vector<8x64xf32>
    %65 = tpu.matmul %63, %64, %cst_11 {dimension_numbers = #tpu.dot_dimension_numbers<[1], [0], [0], [1], [0, 0, 1, 1], [], []>} : vector<8x96xbf16>, vector<96x64xbf16>, vector<8x64xf32> -> vector<8x64xf32>
    %c0_12 = arith.constant 0 : index
    %c0_13 = arith.constant 0 : index
    %66 = vector.load %arg5[%c0_12, %c0_13] : memref<1x64xf32, #tpu.memory_space<vmem>>, vector<1x64xf32>
    %67 = vector.broadcast %66 : vector<1x64xf32> to vector<8x64xf32>
    %68 = arith.addf %65, %67 : vector<8x64xf32>
    %cst_14 = arith.constant 0.000000e+00 : f32
    %69 = vector.broadcast %cst_14 : f32 to vector<8x64xf32>
    %70 = arith.maximumf %68, %69 : vector<8x64xf32>
    %71 = vector.shape_cast %70 : vector<8x64xf32> to vector<1x8x64xf32>
    %72 = vector.extract_strided_slice %71 {offsets = [0, 0, 0], sizes = [1, 1, 64], strides = [1, 1, 1]} : vector<1x8x64xf32> to vector<1x1x64xf32>
    %73 = vector.shape_cast %72 : vector<1x1x64xf32> to vector<1x64xf32>
    %74 = vector.extract_strided_slice %71 {offsets = [0, 1, 0], sizes = [1, 1, 64], strides = [1, 1, 1]} : vector<1x8x64xf32> to vector<1x1x64xf32>
    %75 = vector.shape_cast %74 : vector<1x1x64xf32> to vector<1x64xf32>
    %76 = arith.maximumf %73, %75 : vector<1x64xf32>
    %77 = vector.extract_strided_slice %71 {offsets = [0, 2, 0], sizes = [1, 1, 64], strides = [1, 1, 1]} : vector<1x8x64xf32> to vector<1x1x64xf32>
    %78 = vector.shape_cast %77 : vector<1x1x64xf32> to vector<1x64xf32>
    %79 = vector.extract_strided_slice %71 {offsets = [0, 3, 0], sizes = [1, 1, 64], strides = [1, 1, 1]} : vector<1x8x64xf32> to vector<1x1x64xf32>
    %80 = vector.shape_cast %79 : vector<1x1x64xf32> to vector<1x64xf32>
    %81 = arith.maximumf %78, %80 : vector<1x64xf32>
    %82 = vector.extract_strided_slice %71 {offsets = [0, 4, 0], sizes = [1, 1, 64], strides = [1, 1, 1]} : vector<1x8x64xf32> to vector<1x1x64xf32>
    %83 = vector.shape_cast %82 : vector<1x1x64xf32> to vector<1x64xf32>
    %84 = vector.extract_strided_slice %71 {offsets = [0, 5, 0], sizes = [1, 1, 64], strides = [1, 1, 1]} : vector<1x8x64xf32> to vector<1x1x64xf32>
    %85 = vector.shape_cast %84 : vector<1x1x64xf32> to vector<1x64xf32>
    %86 = arith.maximumf %83, %85 : vector<1x64xf32>
    %87 = vector.extract_strided_slice %71 {offsets = [0, 6, 0], sizes = [1, 1, 64], strides = [1, 1, 1]} : vector<1x8x64xf32> to vector<1x1x64xf32>
    %88 = vector.shape_cast %87 : vector<1x1x64xf32> to vector<1x64xf32>
    %89 = vector.extract_strided_slice %71 {offsets = [0, 7, 0], sizes = [1, 1, 64], strides = [1, 1, 1]} : vector<1x8x64xf32> to vector<1x1x64xf32>
    %90 = vector.shape_cast %89 : vector<1x1x64xf32> to vector<1x64xf32>
    %91 = arith.maximumf %88, %90 : vector<1x64xf32>
    %92 = tpu.concatenate %76, %81, %86, %91 in 1 : vector<1x64xf32>, vector<1x64xf32>, vector<1x64xf32>, vector<1x64xf32> -> vector<1x256xf32>
    %93 = arith.truncf %92 : vector<1x256xf32> to vector<1x256xbf16>
    %c0_15 = arith.constant 0 : index
    %c0_16 = arith.constant 0 : index
    %94 = vector.load %arg6[%c0_15, %c0_16] : memref<256x1024xbf16, #tpu.memory_space<vmem>>, vector<256x1024xbf16>
    %cst_17 = arith.constant dense<0.000000e+00> : vector<1x1024xf32>
    %95 = tpu.matmul %93, %94, %cst_17 {dimension_numbers = #tpu.dot_dimension_numbers<[1], [0], [0], [1], [0, 0, 1, 1], [], []>} : vector<1x256xbf16>, vector<256x1024xbf16>, vector<1x1024xf32> -> vector<1x1024xf32>
    %c0_18 = arith.constant 0 : index
    %c0_19 = arith.constant 0 : index
    %96 = vector.load %arg7[%c0_18, %c0_19] : memref<1x1024xf32, #tpu.memory_space<vmem>>, vector<1x1024xf32>
    %97 = arith.addf %95, %96 : vector<1x1024xf32>
    %cst_20 = arith.constant 0.000000e+00 : f32
    %98 = vector.broadcast %cst_20 : f32 to vector<1x1024xf32>
    %99 = arith.maximumf %97, %98 : vector<1x1024xf32>
    %100 = arith.truncf %99 : vector<1x1024xf32> to vector<1x1024xbf16>
    %c0_21 = arith.constant 0 : index
    %c0_22 = arith.constant 0 : index
    %101 = vector.load %arg8[%c0_21, %c0_22] : memref<1024x4xbf16, #tpu.memory_space<vmem>>, vector<1024x4xbf16>
    %cst_23 = arith.constant dense<0.000000e+00> : vector<1x4xf32>
    %102 = tpu.matmul %100, %101, %cst_23 {dimension_numbers = #tpu.dot_dimension_numbers<[1], [0], [0], [1], [0, 0, 1, 1], [], []>} : vector<1x1024xbf16>, vector<1024x4xbf16>, vector<1x4xf32> -> vector<1x4xf32>
    %c0_24 = arith.constant 0 : index
    %c0_25 = arith.constant 0 : index
    %103 = vector.load %arg9[%c0_24, %c0_25] : memref<1x4xf32, #tpu.memory_space<vmem>>, vector<1x4xf32>
    %104 = arith.addf %102, %103 : vector<1x4xf32>
    %105 = vector.shape_cast %104 : vector<1x4xf32> to vector<1x1x4xf32>
    %c0_26 = arith.constant 0 : index
    %c0_27 = arith.constant 0 : index
    %c0_28 = arith.constant 0 : index
    %106 = vector.load %arg10[%c0_26, %c0_27, %c0_28] : memref<1x1x4xf32, #tpu.memory_space<vmem>>, vector<1x1x4xf32>
    tpu.vector_store %arg10[%c0_26, %c0_27, %c0_28], %105 {strides = array<i32>} : memref<1x1x4xf32, #tpu.memory_space<vmem>>, vector<1x1x4xf32>,
    return
  }
  func.func @transform_0(%arg0: i32) -> (i32, i32, i32) {
    %c0_i32 = arith.constant 0 : i32
    %c0_i32_0 = arith.constant 0 : i32
    %c0_i32_1 = arith.constant 0 : i32
    return %arg0, %c0_i32, %c0_i32_0 : i32, i32, i32
  }
  func.func @transform_1(%arg0: i32) -> (i32, i32, i32) {
    %c0_i32 = arith.constant 0 : i32
    %c0_i32_0 = arith.constant 0 : i32
    %c0_i32_1 = arith.constant 0 : i32
    %c0_i32_2 = arith.constant 0 : i32
    return %c0_i32, %c0_i32_0, %c0_i32_1 : i32, i32, i32
  }
  func.func @transform_2(%arg0: i32) -> (i32, i32) {
    %c0_i32 = arith.constant 0 : i32
    %c0_i32_0 = arith.constant 0 : i32
    %c0_i32_1 = arith.constant 0 : i32
    return %c0_i32, %c0_i32_0 : i32, i32
  }
  func.func @transform_3(%arg0: i32) -> (i32, i32) {
    %c0_i32 = arith.constant 0 : i32
    %c0_i32_0 = arith.constant 0 : i32
    %c0_i32_1 = arith.constant 0 : i32
    return %c0_i32, %c0_i32_0 : i32, i32
  }
  func.func @transform_4(%arg0: i32) -> (i32, i32) {
    %c0_i32 = arith.constant 0 : i32
    %c0_i32_0 = arith.constant 0 : i32
    %c0_i32_1 = arith.constant 0 : i32
    return %c0_i32, %c0_i32_0 : i32, i32
  }
  func.func @transform_5(%arg0: i32) -> (i32, i32) {
    %c0_i32 = arith.constant 0 : i32
    %c0_i32_0 = arith.constant 0 : i32
    %c0_i32_1 = arith.constant 0 : i32
    return %c0_i32, %c0_i32_0 : i32, i32
  }
  func.func @transform_6(%arg0: i32) -> (i32, i32) {
    %c0_i32 = arith.constant 0 : i32
    %c0_i32_0 = arith.constant 0 : i32
    %c0_i32_1 = arith.constant 0 : i32
    return %c0_i32, %c0_i32_0 : i32, i32
  }
  func.func @transform_7(%arg0: i32) -> (i32, i32) {
    %c0_i32 = arith.constant 0 : i32
    %c0_i32_0 = arith.constant 0 : i32
    %c0_i32_1 = arith.constant 0 : i32
    return %c0_i32, %c0_i32_0 : i32, i32
  }
  func.func @transform_8(%arg0: i32) -> (i32, i32) {
    %c0_i32 = arith.constant 0 : i32
    %c0_i32_0 = arith.constant 0 : i32
    %c0_i32_1 = arith.constant 0 : i32
    return %c0_i32, %c0_i32_0 : i32, i32
  }
  func.func @transform_9(%arg0: i32) -> (i32, i32, i32) {
    %c0_i32 = arith.constant 0 : i32
    %c0_i32_0 = arith.constant 0 : i32
    %c0_i32_1 = arith.constant 0 : i32
    return %arg0, %c0_i32, %c0_i32_0 : i32, i32, i32
  }
}

</mosaic_0001>

<bundles_post_ra>
// kernel: cnn_forward.1
= control target key start
LH: loop header
LB: loop body
LE: loop exit
PB: predicated region body
PF: predicated region fallthrough
CT: control target
= control target key end

     0   :  { %14 = vsyncpa [#allocation3], 0  ;;  %s3318_s0 = inlined_call_operand.vmem [shape: f32[2,8,2], index: 0, kind: input, shape index: {}]   ;;  %s3319_s1 = inlined_call_operand.vmem [shape: f32[3,1,32], index: 1, kind: input, shape index: {}]   ;;  %s3320_s2 = inlined_call_operand.vmem [shape: f32[1,32], index: 2, kind: input, shape index: {}]   ;;  %s3321_s3 = inlined_call_operand.vmem [shape: bf16[96,64], index: 3, kind: input, shape index: {}]   ;;  %s3322_s4 = inlined_call_operand.vmem [shape: f32[1,64], index: 4, kind: input, shape index: {}]   ;;  %s3323_s5 = inlined_call_operand.hbm [shape: bf16[256,1024], index: 5, kind: input, shape index: {}]   ;;  %s3324_s6 = inlined_call_operand.vmem [shape: f32[1,1024], index: 6, kind: input, shape index: {}]   ;;  %s3325_s7 = inlined_call_operand.vmem [shape: bf16[1024,4], index: 7, kind: input, shape index: {}]   ;;  %s3326_s8 = inlined_call_operand.vmem [shape: f32[1,4], index: 8, kind: input, shape index: {}]   ;;  %s3327_s9 = inlined_call_operand.hbm [shape: f32[2,1,4], index: 9, kind: output, shape index: {}]  }
   0x1   :  { %15 = vsyncpa [#allocation4], 0 }
   0x2   :  { %17 = vsyncpa [#allocation4 + $0x1], 0  ;;  %s2917_s30 = smov 0   ;;  %s2919_s10 = smov 0  }
   0x3   :  { %s2921_s11 = smov 0   ;;  %s2923_s12 = smov 0  }
   0x4 LB: > { %s2938_s13 = sadd.s32 4294967295, %s2854_s12   ;;  %s2297_s14 = sadd.s32 4294967294, %s2854_s12   ;;  %s2854_s12 = sphi %s2923_s12, %s3343_s12   ;;  %s2850_s11 = sphi %s2921_s11, %s3342_s11   ;;  %s2846_s10 = sphi %s2919_s10, %s3341_s10   ;;  %s2842_s30 = sphi %s2917_s30, %s3340_s30  }
   0x5   : > { %s2942_s15 = sadd.s32 1, %s2854_s12   ;;  %s224_s16 = sadd.s32 1, %s2850_s11 }
   0x6   : > { %s221_s17 = ssub.s32 %s2854_s12, %s2942_s15  ;;  %p234_p0 = scmp.ne.s32.totalorder %s2850_s11, %s2846_s10 }
   0x7   : > { %p222_p1 = scmp.eq.s32.totalorder %s221_s17, 0  ;;  %p235_p2 = scmp.eq.s32.totalorder %s2938_s13, 1 }
   0x8   : > { %p240_p3 = scmp.ne.s32.totalorder %s2846_s10, %s2842_s30  ;;  %p241_p4 = scmp.eq.s32.totalorder %s2297_s14, 1 }
   0x9   : > { %s2953_s18 = scalar_select %p222_p1, %s2850_s11, %s224_s16  }
   0xa   : > { %p2955_p5 = por %p235_p2, %p234_p0  ;;  %p2959_p6 = por %p241_p4, %p240_p3 }
   0xb   : > { %p2298_p7 = scmp.ge.s32.totalorder %s2854_s12, 1  ;;  %p248_p8 = scmp.lt.s32.totalorder %s2854_s12, 3 }
   0xc   : > { %s3331_s19 = scalar_select %p2955_p5, 1, 0 }
   0xd   : > { %s3332_s20 = scalar_select %p2959_p6, 1, 0 }
   0xe   : > { %p3328_p9 = scmp.eq.s32.totalorder %s2938_s13, 0  ;;  %p2966_p10 = pnand %p2298_p7, %p248_p8 }
   0xf   : > { %s2856_s22 = smov [#allocation2]   ;;  %s2760_s27 = scalar_lea.hbm %s3323_s5, 16384 }
  0x10   : > { %s3333_s21 = scalar_select %p2966_p10, 1, 0 }
  0x11   : > { %s272_s23 = sshll.u32 %s2856_s22, 4  ;;  %p2628_p11 = pneg %p2966_p10  ;;  %s273_s23 = int_to_ptr.vmem [resolvable:$true] %s272_s23 }
  0x12   : > { %p2761_p13 = scmp.ne.s32.totalorder %s3323_s5, %s2760_s27  ;;  %p2767_p3 = scmp.lt.u32.totalorder %s2760_s27, %s3323_s5 }
  0x13   : > { %p2974_p12 = pnand %p3328_p9, %p2628_p11 }
  0x15   : > { %p2762_p0 = pneg %p2974_p12 }
  0x17   : > { %p2763_p1 = pnand %p2762_p0, %p2761_p13 }
  0x19   : > { %p2764_p2 = pneg %p2763_p1 }
  0x1b   : > { %p2769_p4 = pnand %p2767_p3, %p2764_p2 }
  0x1d   : > { %2772 = shalt.err (!%p2769_p4)
}
  0x1e   : > { %s2773_s17 = scalar_lea.vmem %s273_s23, 16384  ;;  %p2781_p9 = scmp.lt.s32.totalorder %s273_s23, %s273_s23 }
  0x1f   : > { %p2774_p7 = scmp.ne.s32.totalorder %s273_s23, %s2773_s17  ;;  %p2782_p6 = scmp.lt.s32.totalorder %s2773_s17, %s2773_s17 }
  0x21   : > { %p2776_p8 = pnand %p2774_p7, %p2762_p0  ;;  %p2783_p5 = por %p2782_p6, %p2781_p9 }
  0x23   : > { %p2777_p11 = pneg %p2776_p8 }
  0x25   : > { %p2784_p10 = pnand %p2783_p5, %p2777_p11 }
  0x27   : > { %2787 = shalt.err (!%p2784_p10)
}
  0x28   : > { %s2857_s22 = smov 512   ;;  %s2858_s25 = smov 32  }
  0x29   : > { %2631 = dma.hbm_to_vmem [thread:$0]  (!%p2974_p12), %s3323_s5, 16384, %s273_s23, [#allocation3], %s2857_s22, %s2857_s22, %s2858_s25  }
  0x2a   : > { %p3335_p13 = scmp.ne.s32.totalorder %s3333_s21, 0 }
  0x2b   : > { %p3336_p1 = scmp.eq.s32.totalorder (!%p3335_p13), %s2938_s13, 0 }
  0x2c   : > { %304 = sbr.rel (%p3335_p13) target bundleno = 1300 (0x514), region = 56 }
  0x33   : > { %2833 = dma.done.wait (%p3336_p1), [#allocation3], 16384   ;;  %p3337_p0 = pmov %p3336_p1 }
  0x34   : > { %p338_p5 = scmp.lt.s32.totalorder %s2938_s13, 1  ;;  %v2859_v0 = vmov 0   ;;  %s2860_s21 = smov 127   ;;  %vm353_vm0 = vcmask 1046528   ;;  %v2861_v4 = vmov 1   ;;  %vm349_vm1 = vcmask 1040384  }
  0x35   : > { %2835 = vsyncadd (%p3337_p0), [#allocation3], 4294950912  ;;  %2682 = vset.pattern.permute.xlu1 %v2859_v0  ;;  %2681 = vset.pattern.permute.xlu0 %v2859_v0  ;;  %v2690_v8 = vld [vmem:[%s3321_s3] sm:$0xff]   ;;  %v2862_v9 = vmov 0.0   ;;  %v2691_v10 = vld [vmem:[%s3321_s3 + $0x8] sm:$0xff]   ;;  %vm2863_vm2 = vmmov 0  }
  0x36   : > { %s339_s24 = scalar_select %p338_p5, %s2938_s13, 1  ;;  %2606 = vmatprep.subr.bf16.mxu0 %v2862_v9  ;;  %v2692_v11 = vld [vmem:[%s3321_s3 + $0x10] sm:$0xff]   ;;  %v2693_v12 = vld [vmem:[%s3321_s3 + $0x18] sm:$0xff]   ;;  %v2694_v13 = vld [vmem:[%s3321_s3 + $0x20] sm:$0xff]   ;;  %2618 = vmatprep.mubr.msk.bf16.mxu0 %vm2863_vm2, %v2862_v9  ;;  %vm428_vm3 = vcmask 261120   ;;  %vm430_vm4 = vcmask 523264  }
  0x37   : > { %2607 = vmatpush3.bf16.msra.mxu0 %v2690_v8  ;;  %v2305_v16 = vld [vmem:[%s3319_s1 + $0x1] ss:$0 sm:$0xff]  ;;  %v2304_v17 = vld [vmem:[%s3319_s1] ss:$0 sm:$0xff]  ;;  %v2306_v20 = vld [vmem:[%s3319_s1 + $0x2] ss:$0 sm:$0xff] }
  0x38   : > { %s2303_s27 = sshll.u32 %s339_s24, 3  ;;  %2608 = vmatprep.subr.bf16.mxu0 %v2862_v9  ;;  %v2695_v27 = vld [vmem:[%s3321_s3 + $0x28] sm:$0xff]   ;;  %v2307_v32 = vld [vmem:[%s3320_s2] ss:$0 sm:$0xff]  ;;  %s2864_s29 = smov 32   ;;  %vm488_vm5 = vcmask 785408  }
  0x39   : > { %s341_s23 = scalar_lea.vmem %s3318_s0, %s2303_s27  ;;  %s2865_s14 = smov 64   ;;  %v552_v45 = vld [vmem:[#allocation2] sm:$0xff]  ;;  %v553_v47 = vld [vmem:[#allocation2 + $0x8] sm:$0xff]  ;;  %vm2215_vm6 = vcmask 24576  }
  0x3a   : > { %v343_v1 = vld [vmem:[%s341_s23] sm:$0xff]  ;;  %v557_v49 = vld [vmem:[#allocation2 + $0x28] sm:$0xff]  ;;  %s336_s16 = sand.u32 1, %s2846_s10   ;;  %s2508_s17 = sshll.u32 %s2938_s13, 4 }
  0x3b   : > { %v345_v2 = vrot.slane %v343_v1, 7  ;;  %371 = vperm.xlu1 %2682, %v343_v1   ;;  %v351_v3 = vrot.slane %v343_v1, 1  ;;  %2609 = vmatpush3.bf16.msra.mxu0 %v2691_v10  ;;  %v556_v46 = vld [vmem:[#allocation2 + $0x20] sm:$0xff]  ;;  %v2318_v53 = vcombine.low %v553_v47, %v557_v49  ;;  %v2319_v54 = vcombine.high %v553_v47, %v557_v49  ;;  %v561_v56 = vld [vmem:[#allocation2 + $0x48] sm:$0xff]  ;;  %s337_s22 = scalar_lea.vmem [#allocation5], %s336_s16  ;;  %s3276_s24 = scalar_lea.hbm %s3327_s9, %s2508_s17 }
  0x3c   : > { %2610 = vmatprep.subr.bf16.mxu0 %v2862_v9  ;;  %v2317_v48 = vcombine.high %v552_v45, %v556_v46  ;;  %v2316_v50 = vcombine.low %v552_v45, %v556_v46  ;;  %v560_v51 = vld [vmem:[#allocation2 + $0x40] sm:$0xff]  ;;  %v565_v57 = vld [vmem:[#allocation2 + $0x68] sm:$0xff]  ;;  %s2230_s25 = sshll.u32 %s337_s22, 4  ;;  %s2218_s27 = scalar_lea.sflag [#allocation4], %s336_s16  ;;  %s3278_s25 = int_to_ptr.vmem [resolvable:$true] %s2230_s25 }
  0x3d   : > { %346 = vrot.lane.b32.xlu0 %v345_v2, %s2860_s21  ;;  %v354_v5 = vsel %vm353_vm0, %v351_v3, 0.0  ;;  %v564_v52 = vld [vmem:[#allocation2 + $0x60] sm:$0xff]  ;;  %v2327_v59 = vcombine.high %v561_v56, %v565_v57  ;;  %v569_v61 = vld [vmem:[#allocation2 + $0x88] sm:$0xff]  ;;  %p3338_p9 = scmp.ne.s32.totalorder %s3331_s19, 0  ;;  %s2866_s13 = smov [#allocation5]  }
  0x3e   : > { %v2325_v55 = vcombine.high %v560_v51, %v564_v52  ;;  %v568_v58 = vld [vmem:[#allocation2 + $0x80] sm:$0xff]  ;;  %1362 = vmatprep.subr.bf16.mxu1 %v2317_v48  ;;  %v573_v62 = vld [vmem:[#allocation2 + $0xa8] sm:$0xff]  ;;  %v2324_v63 = vcombine.low %v560_v51, %v564_v52 }
  0x3f   : > { %2683 = vset.pattern.permute.xlu1 %v2861_v4  ;;  %2611 = vmatpush3.bf16.msra.mxu0 %v2692_v11  ;;  %v572_v60 = vld [vmem:[#allocation2 + $0xa0] sm:$0xff]  ;;  %v2335_v2 = vcombine.high %v569_v61, %v573_v62  ;;  %v2334_v8 = vcombine.low %v569_v61, %v573_v62  ;;  %v617_v45 = vld [vmem:[#allocation2 + $0x208] sm:$0xff] }
  0x40   : > { %383 = vperm.xlu1 %2683, %v343_v1   ;;  %2612 = vmatprep.subr.bf16.mxu0 %v2862_v9  ;;  %v2333_v1 = vcombine.high %v568_v58, %v572_v60  ;;  %v576_v3 = vld [vmem:[#allocation2 + $0xc0] sm:$0xff]  ;;  %v621_v46 = vld [vmem:[#allocation2 + $0x228] sm:$0xff] }
  0x41   : > { %1363 = vmatpush1.bf16.msra.mxu1 %v2316_v50  ;;  %v580_v4 = vld [vmem:[#allocation2 + $0xe0] sm:$0xff]  ;;  %v2383_v50 = vcombine.high %v617_v45, %v621_v46  ;;  %v633_v61 = vld [vmem:[#allocation2 + $0x288] sm:$0xff] }
  0x42   : > { %1364 = vmatprep.subr.bf16.mxu1 %v2325_v55  ;;  %v584_v11 = vld [vmem:[#allocation2 + $0x100] sm:$0xff]  ;;  %v637_v62 = vld [vmem:[#allocation2 + $0x2a8] sm:$0xff] }
  0x43   : > { %2613 = vmatpush3.bf16.msra.mxu0 %v2693_v12  ;;  %v588_v12 = vld [vmem:[#allocation2 + $0x120] sm:$0xff] }
  0x44   : > { %2684 = vset.pattern.permute.xlu1 %v2859_v0  ;;  %2614 = vmatprep.subr.bf16.mxu0 %v2862_v9  ;;  %v2326_v0 = vcombine.low %v561_v56, %v565_v57  ;;  %v624_v51 = vld [vmem:[#allocation2 + $0x240] sm:$0xff]  ;;  %v2382_v56 = vcombine.low %v617_v45, %v621_v46 }
  0x45   : > { %399 = vperm.xlu1 %2684, %v354_v5   ;;  %v577_v5 = vld [vmem:[#allocation2 + $0xc8] sm:$0xff]  ;;  %1365 = vmatpush1.bf16.msra.mxu1 %v2324_v63  ;;  %v628_v52 = vld [vmem:[#allocation2 + $0x260] sm:$0xff] }
  0x46   : > { %1366 = vmatprep.subr.bf16.mxu1 %v2333_v1  ;;  %v2389_v57 = vcombine.high %v624_v51, %v628_v52  ;;  %v2388_v63 = vcombine.low %v624_v51, %v628_v52  ;;  %v558_v51 = vld [vmem:[#allocation2 + $0x30] sm:$0xff]  ;;  %v555_v52 = vld [vmem:[#allocation2 + $0x18] sm:$0xff] }
  0x47   : > { %2615 = vmatpush3.bf16.msra.mxu0 %v2694_v13  ;;  %v585_v13 = vld [vmem:[#allocation2 + $0x108] sm:$0xff] }
  0x48   : > { %2616 = vmatprep.subr.bf16.mxu0 %v2862_v9  ;;  %v2341_v9 = vcombine.high %v576_v3, %v580_v4 }
  0x4b   : > { %2617 = vmatpush3.bf16.msra.mxu0 %v2695_v27  ;;  %v600_v27 = vld [vmem:[#allocation2 + $0x180] sm:$0xff] }
  0x4c   : > { %1403 = vmatprep.subr.bf16.mxu0 %v2319_v54  ;;  %v629_v54 = vld [vmem:[#allocation2 + $0x268] sm:$0xff] }
  0xaf   : > { %v347_v6 = vpop.permute.xlu0 %346 }
  0xb0   : > { %v350_v7 = vsel %vm349_vm1, 0.0, %v347_v6  ;;  %v581_v6 = vld [vmem:[#allocation2 + $0xe8] sm:$0xff] }
  0xb1   : > { %360 = vperm.xlu0 %2681, %v350_v7   ;;  %v2332_v7 = vcombine.low %v568_v58, %v572_v60  ;;  %v2343_v10 = vcombine.high %v577_v5, %v581_v6  ;;  %v636_v60 = vld [vmem:[#allocation2 + $0x2a0] sm:$0xff] }
  0xb3   : > { %1367 = vmatpush1.bf16.msra.mxu1 %v2332_v7 }
  0xb4   : > { %1368 = vmatprep.subr.bf16.mxu1 %v2341_v9 }
  0xba   : > { %v372_v14 = vpop.permute.xlu1 %371 }
  0xbb   : > { %v394_v19 = vmul.f32 %v2304_v17, %v372_v14  ;;  %v380_v23 = vmul.f32 %v2305_v16, %v372_v14  ;;  %v589_v14 = vld [vmem:[#allocation2 + $0x128] sm:$0xff] }
  0xbf   : > { %v384_v15 = vpop.permute.xlu1 %383 }
  0xc0   : > { %v395_v18 = vmul.f32 %v2305_v16, %v384_v15  ;;  %v392_v28 = vmul.f32 %v2306_v20, %v384_v15  ;;  %v2340_v15 = vcombine.low %v576_v3, %v580_v4  ;;  %v2342_v16 = vcombine.low %v577_v5, %v581_v6  ;;  %v640_v3 = vld [vmem:[#allocation2 + $0x2c0] sm:$0xff]  ;;  %v641_v5 = vld [vmem:[#allocation2 + $0x2c8] sm:$0xff] }
  0xc1   : > { %v644_v4 = vld [vmem:[#allocation2 + $0x2e0] sm:$0xff]  ;;  %v645_v6 = vld [vmem:[#allocation2 + $0x2e8] sm:$0xff] }
  0xc2   : > { %v396_v25 = vadd.f32 %v395_v18, %v394_v19  ;;  %v2351_v18 = vcombine.high %v585_v13, %v589_v14  ;;  %v592_v19 = vld [vmem:[#allocation2 + $0x140] sm:$0xff]  ;;  %1369 = vmatpush1.bf16.msra.mxu1 %v2340_v15  ;;  %v2405_v9 = vcombine.high %v640_v3, %v644_v4  ;;  %v2404_v15 = vcombine.low %v640_v3, %v644_v4 }
  0xc4   : > { %v400_v21 = vpop.permute.xlu1 %399 }
  0xc5   : > { %v402_v24 = vmul.f32 %v2306_v20, %v400_v21  ;;  %v596_v20 = vld [vmem:[#allocation2 + $0x160] sm:$0xff]  ;;  %v593_v21 = vld [vmem:[#allocation2 + $0x148] sm:$0xff] }
  0xc7   : > { %v403_v30 = vadd.f32 %v402_v24, %v396_v25  ;;  %v2350_v24 = vcombine.low %v585_v13, %v589_v14  ;;  %v2357_v25 = vcombine.high %v592_v19, %v596_v20  ;;  %v649_v13 = vld [vmem:[#allocation2 + $0x308] sm:$0xff] }
  0xc8   : > { %v653_v14 = vld [vmem:[#allocation2 + $0x328] sm:$0xff] }
 0x130   : > { %v361_v22 = vpop.permute.xlu0 %360 }
 0x131   : > { %v369_v26 = vmul.f32 %v2304_v17, %v361_v22  ;;  %v2349_v17 = vcombine.high %v584_v11, %v588_v12  ;;  %v597_v22 = vld [vmem:[#allocation2 + $0x168] sm:$0xff] }
 0x133   : > { %v381_v29 = vadd.f32 %v380_v23, %v369_v26  ;;  %v2348_v23 = vcombine.low %v584_v11, %v588_v12  ;;  %1370 = vmatprep.subr.bf16.mxu1 %v2349_v17  ;;  %v2359_v26 = vcombine.high %v593_v21, %v597_v22  ;;  %v648_v11 = vld [vmem:[#allocation2 + $0x300] sm:$0xff] }
 0x134   : > { %v652_v12 = vld [vmem:[#allocation2 + $0x320] sm:$0xff] }
 0x135   : > { %v393_v31 = vadd.f32 %v392_v28, %v381_v29  ;;  %v604_v28 = vld [vmem:[#allocation2 + $0x1a0] sm:$0xff]  ;;  %v601_v29 = vld [vmem:[#allocation2 + $0x188] sm:$0xff]  ;;  %1371 = vmatpush1.bf16.msra.mxu1 %v2348_v23  ;;  %v2413_v17 = vcombine.high %v648_v11, %v652_v12  ;;  %v2412_v23 = vcombine.low %v648_v11, %v652_v12 }
 0x136   : > { %1372 = vmatprep.subr.bf16.mxu1 %v2357_v25 }
 0x137   : > { %v404_v33 = vmax.f32 %v393_v31, %v403_v30  ;;  %v605_v30 = vld [vmem:[#allocation2 + $0x1a8] sm:$0xff]  ;;  %v2356_v31 = vcombine.low %v592_v19, %v596_v20  ;;  %v656_v19 = vld [vmem:[#allocation2 + $0x340] sm:$0xff] }
 0x138   : > { %v660_v20 = vld [vmem:[#allocation2 + $0x360] sm:$0xff] }
 0x139   : > { %v412_v34 = vadd.f32 %v2307_v32, %v404_v33  ;;  %v2358_v32 = vcombine.low %v593_v21, %v597_v22  ;;  %v2365_v33 = vcombine.high %v600_v27, %v604_v28  ;;  %1373 = vmatpush1.bf16.msra.mxu1 %v2356_v31  ;;  %v657_v21 = vld [vmem:[#allocation2 + $0x348] sm:$0xff]  ;;  %v2421_v25 = vcombine.high %v656_v19, %v660_v20 }
 0x13a   : > { %v661_v22 = vld [vmem:[#allocation2 + $0x368] sm:$0xff]  ;;  %v2420_v31 = vcombine.low %v656_v19, %v660_v20 }
 0x13b   : > { %v413_v35 = vmax.f32 %v412_v34, 0.0  ;;  %v2367_v34 = vcombine.high %v601_v29, %v605_v30  ;;  %1374 = vmatprep.subr.bf16.mxu1 %v2365_v33 }
 0x13d   : > { %421 = vrot.lane.b32.xlu0 %v413_v35, %s2864_s29  ;;  %v418_v36 = vrot.slane %v413_v35, 1  ;;  %v415_v38 = vrot.slane %v413_v35, 7  ;;  %v608_v35 = vld [vmem:[#allocation2 + $0x1c0] sm:$0xff]  ;;  %s2788_s29 = scalar_lea.vmem %s3278_s25, 16 }
 0x13e   : > { %p2789_p6 = scmp.ne.s32.totalorder %s3278_s25, %s2788_s29 }
 0x13f   : > { %v420_v37 = vsel %vm353_vm0, %v418_v36, 0.0  ;;  %v417_v40 = vsel %vm349_vm1, 0.0, %v415_v38  ;;  %v612_v36 = vld [vmem:[#allocation2 + $0x1e0] sm:$0xff]  ;;  %v613_v38 = vld [vmem:[#allocation2 + $0x1e8] sm:$0xff] }
 0x140   : > { %425 = vrot.lane.b32.xlu1 %v420_v37, %s2865_s14  ;;  %v609_v37 = vld [vmem:[#allocation2 + $0x1c8] sm:$0xff]  ;;  %v2372_v47 = vcombine.low %v608_v35, %v612_v36  ;;  %p2790_p10 = pnand %p2789_p6, %p3338_p9 }
 0x141   : > { %v2374_v48 = vcombine.low %v609_v37, %v613_v38 }
 0x142   : > { %p2791_p12 = pneg %p2790_p10 }
 0x1af   : > { %v422_v39 = vpop.permute.xlu0 %421 }
 0x1b0   : > { %v429_v41 = vsel %vm428_vm3, %v417_v40, %v422_v39  ;;  %v2364_v39 = vcombine.low %v600_v27, %v604_v28  ;;  %v2366_v40 = vcombine.low %v601_v29, %v605_v30  ;;  %v664_v27 = vld [vmem:[#allocation2 + $0x380] sm:$0xff]  ;;  %v665_v29 = vld [vmem:[#allocation2 + $0x388] sm:$0xff] }
 0x1b1   : > { %v668_v28 = vld [vmem:[#allocation2 + $0x3a0] sm:$0xff]  ;;  %v669_v30 = vld [vmem:[#allocation2 + $0x3a8] sm:$0xff] }
 0x1b2   : > { %v426_v42 = vpop.permute.xlu1 %425  ;;  %1375 = vmatpush1.bf16.msra.mxu1 %v2364_v39  ;;  %v2429_v33 = vcombine.high %v664_v27, %v668_v28  ;;  %v676_v39 = vld [vmem:[#allocation2 + $0x3e0] sm:$0xff] }
 0x1b3   : > { %v431_v43 = vsel %vm430_vm4, %v429_v41, %v426_v42  ;;  %v2373_v41 = vcombine.high %v608_v35, %v612_v36  ;;  %v2375_v42 = vcombine.high %v609_v37, %v613_v38  ;;  %v2428_v35 = vcombine.low %v664_v27, %v668_v28  ;;  %v2308_v37 = vld [vmem:[%s3322_s4] ss:$0 sm:$0xff] }
 0x1b4   : > { %v432_v44 = vpack.c.bf16 %v431_v43, %v431_v43  ;;  %v616_v43 = vld [vmem:[#allocation2 + $0x200] sm:$0xff]  ;;  %v2430_v36 = vcombine.low %v665_v29, %v669_v30 }
 0x1b5   : > { %1376 = vmatprep.subr.bf16.mxu1 %v2373_v41  ;;  %v672_v38 = vld [vmem:[#allocation2 + $0x3c0] sm:$0xff] }
 0x1b6   : > { %2619 = vmatmul.mubr.msk.bf16.vlgmr.msra.gmra.mrb[0].mxu0 %vm488_vm5, %v432_v44  ;;  %v620_v44 = vld [vmem:[#allocation2 + $0x220] sm:$0xff]  ;;  %1377 = vmatpush1.bf16.msra.mxu1 %v2372_v47  ;;  %v2437_v41 = vcombine.high %v672_v38, %v676_v39  ;;  %v2436_v46 = vcombine.low %v672_v38, %v676_v39  ;;  %v594_v39 = vld [vmem:[#allocation2 + $0x150] sm:$0xff] }
 0x1b7   : > { %1404 = vmatpush1.bf16.msra.mxu0 %v2318_v53  ;;  %v2381_v49 = vcombine.high %v616_v43, %v620_v44  ;;  %v625_v53 = vld [vmem:[#allocation2 + $0x248] sm:$0xff]  ;;  %v2380_v55 = vcombine.low %v616_v43, %v620_v44 }
 0x1b8   : > { %1405 = vmatprep.subr.bf16.mxu0 %v2327_v59  ;;  %v2391_v58 = vcombine.high %v625_v53, %v629_v54  ;;  %v632_v59 = vld [vmem:[#allocation2 + $0x280] sm:$0xff] }
 0x1b9   : > { %1378 = vmatprep.subr.bf16.mxu1 %v2381_v49  ;;  %v2397_v1 = vcombine.high %v632_v59, %v636_v60  ;;  %v2396_v7 = vcombine.low %v632_v59, %v636_v60 }
 0x1ba   : > { %1379 = vmatpush1.bf16.msra.mxu1 %v2380_v55 }
 0x1bb   : > { %1406 = vmatpush1.bf16.msra.mxu0 %v2326_v0  ;;  %1380 = vmatprep.subr.bf16.mxu1 %v2389_v57  ;;  %v2390_v0 = vcombine.low %v625_v53, %v629_v54 }
 0x1bc   : > { %1407 = vmatprep.subr.bf16.mxu0 %v2335_v2  ;;  %v2399_v2 = vcombine.high %v633_v61, %v637_v62 }
 0x1be   : > { %1381 = vmatpush1.bf16.msra.mxu1 %v2388_v63 }
 0x1bf   : > { %1408 = vmatpush1.bf16.msra.mxu0 %v2334_v8  ;;  %1382 = vmatprep.subr.bf16.mxu1 %v2397_v1  ;;  %v2398_v8 = vcombine.low %v633_v61, %v637_v62 }
 0x1c0   : > { %1409 = vmatprep.subr.bf16.mxu0 %v2343_v10  ;;  %v2407_v10 = vcombine.high %v641_v5, %v645_v6 }
 0x1c2   : > { %1383 = vmatpush1.bf16.msra.mxu1 %v2396_v7 }
 0x1c3   : > { %1410 = vmatpush1.bf16.msra.mxu0 %v2342_v16  ;;  %1384 = vmatprep.subr.bf16.mxu1 %v2405_v9  ;;  %v2406_v16 = vcombine.low %v641_v5, %v645_v6  ;;  %v562_v5 = vld [vmem:[#allocation2 + $0x50] sm:$0xff]  ;;  %v563_v9 = vld [vmem:[#allocation2 + $0x58] sm:$0xff] }
 0x1c4   : > { %1411 = vmatprep.subr.bf16.mxu0 %v2351_v18  ;;  %v2415_v18 = vcombine.high %v649_v13, %v653_v14 }
 0x1c6   : > { %1385 = vmatpush1.bf16.msra.mxu1 %v2404_v15 }
 0x1c7   : > { %1412 = vmatpush1.bf16.msra.mxu0 %v2350_v24  ;;  %1386 = vmatprep.subr.bf16.mxu1 %v2413_v17  ;;  %v2414_v24 = vcombine.low %v649_v13, %v653_v14  ;;  %v570_v13 = vld [vmem:[#allocation2 + $0x90] sm:$0xff]  ;;  %v571_v17 = vld [vmem:[#allocation2 + $0x98] sm:$0xff] }
 0x1c8   : > { %1413 = vmatprep.subr.bf16.mxu0 %v2359_v26  ;;  %v2423_v26 = vcombine.high %v657_v21, %v661_v22 }
 0x1ca   : > { %1387 = vmatpush1.bf16.msra.mxu1 %v2412_v23  ;;  %v578_v23 = vld [vmem:[#allocation2 + $0xd0] sm:$0xff] }
 0x1cb   : > { %1414 = vmatpush1.bf16.msra.mxu0 %v2358_v32  ;;  %1388 = vmatprep.subr.bf16.mxu1 %v2421_v25  ;;  %v2422_v32 = vcombine.low %v657_v21, %v661_v22  ;;  %v579_v25 = vld [vmem:[#allocation2 + $0xd8] sm:$0xff] }
 0x1cc   : > { %1415 = vmatprep.subr.bf16.mxu0 %v2367_v34  ;;  %v2431_v34 = vcombine.high %v665_v29, %v669_v30 }
 0x1ce   : > { %1389 = vmatpush1.bf16.msra.mxu1 %v2420_v31  ;;  %v586_v31 = vld [vmem:[#allocation2 + $0x110] sm:$0xff] }
 0x1cf   : > { %1416 = vmatpush1.bf16.msra.mxu0 %v2366_v40  ;;  %1390 = vmatprep.subr.bf16.mxu1 %v2429_v33  ;;  %v673_v40 = vld [vmem:[#allocation2 + $0x3c8] sm:$0xff]  ;;  %v587_v33 = vld [vmem:[#allocation2 + $0x118] sm:$0xff] }
 0x1d0   : > { %1417 = vmatprep.subr.bf16.mxu0 %v2375_v42  ;;  %v677_v42 = vld [vmem:[#allocation2 + $0x3e8] sm:$0xff] }
 0x1d1   : > { %v2438_v44 = vcombine.low %v673_v40, %v677_v42  ;;  %v2439_v45 = vcombine.high %v673_v40, %v677_v42  ;;  %v598_v40 = vld [vmem:[#allocation2 + $0x170] sm:$0xff]  ;;  %v599_v42 = vld [vmem:[#allocation2 + $0x178] sm:$0xff] }
 0x1d2   : > { %1391 = vmatpush1.bf16.msra.mxu1 %v2428_v35 }
 0x1d3   : > { %1418 = vmatpush1.bf16.msra.mxu0 %v2374_v48  ;;  %1392 = vmatprep.subr.bf16.mxu1 %v2437_v41  ;;  %v595_v41 = vld [vmem:[#allocation2 + $0x158] sm:$0xff] }
 0x1d4   : > { %1419 = vmatprep.subr.bf16.mxu0 %v2383_v50  ;;  %v554_v50 = vld [vmem:[#allocation2 + $0x10] sm:$0xff] }
 0x1d5   : > { %v2321_v55 = vcombine.high %v554_v50, %v558_v51  ;;  %v2320_v57 = vcombine.low %v554_v50, %v558_v51  ;;  %v607_v50 = vld [vmem:[#allocation2 + $0x1b8] sm:$0xff]  ;;  %v2360_v51 = vcombine.low %v594_v39, %v598_v40 }
 0x1d6   : > { %1393 = vmatpush1.bf16.msra.mxu1 %v2436_v46  ;;  %v2363_v46 = vcombine.high %v595_v41, %v599_v42 }
 0x1d7   : > { %1420 = vmatpush1.bf16.msra.mxu0 %v2382_v56  ;;  %v559_v56 = vld [vmem:[#allocation2 + $0x38] sm:$0xff]  ;;  %1444 = vmatprep.subr.bf16.mxu1 %v2321_v55  ;;  %v610_v55 = vld [vmem:[#allocation2 + $0x1d0] sm:$0xff] }
 0x1d8   : > { %1421 = vmatprep.subr.bf16.mxu0 %v2391_v58  ;;  %v2322_v58 = vcombine.low %v555_v52, %v559_v56  ;;  %v2323_v59 = vcombine.high %v555_v52, %v559_v56  ;;  %v2362_v52 = vcombine.low %v595_v41, %v599_v42  ;;  %v614_v56 = vld [vmem:[#allocation2 + $0x1f0] sm:$0xff]  ;;  %v659_v42 = vld [vmem:[#allocation2 + $0x358] sm:$0xff] }
 0x1d9   : > { %v662_v41 = vld [vmem:[#allocation2 + $0x370] sm:$0xff] }
 0x1db   : > { %1422 = vmatpush1.bf16.msra.mxu0 %v2390_v0 }
 0x1dc   : > { %1423 = vmatprep.subr.bf16.mxu0 %v2399_v2 }
 0x1df   : > { %1424 = vmatpush1.bf16.msra.mxu0 %v2398_v8  ;;  %v566_v8 = vld [vmem:[#allocation2 + $0x70] sm:$0xff] }
 0x1e0   : > { %1425 = vmatprep.subr.bf16.mxu0 %v2407_v10  ;;  %v567_v10 = vld [vmem:[#allocation2 + $0x78] sm:$0xff]  ;;  %v2329_v14 = vcombine.high %v562_v5, %v566_v8  ;;  %v2328_v19 = vcombine.low %v562_v5, %v566_v8  ;;  %v630_v8 = vld [vmem:[#allocation2 + $0x270] sm:$0xff] }
 0x1e1   : > { %v2331_v15 = vcombine.high %v563_v9, %v567_v10  ;;  %v2330_v20 = vcombine.low %v563_v9, %v567_v10  ;;  %v627_v9 = vld [vmem:[#allocation2 + $0x258] sm:$0xff] }
 0x1e2   : > { %v631_v10 = vld [vmem:[#allocation2 + $0x278] sm:$0xff] }
 0x1e3   : > { %1426 = vmatpush1.bf16.msra.mxu0 %v2406_v16  ;;  %v574_v16 = vld [vmem:[#allocation2 + $0xb0] sm:$0xff] }
 0x1e4   : > { %1427 = vmatprep.subr.bf16.mxu0 %v2415_v18  ;;  %v575_v18 = vld [vmem:[#allocation2 + $0xb8] sm:$0xff]  ;;  %v2337_v21 = vcombine.high %v570_v13, %v574_v16  ;;  %v2336_v27 = vcombine.low %v570_v13, %v574_v16  ;;  %v634_v16 = vld [vmem:[#allocation2 + $0x290] sm:$0xff] }
 0x1e5   : > { %v2339_v22 = vcombine.high %v571_v17, %v575_v18  ;;  %v2338_v28 = vcombine.low %v571_v17, %v575_v18  ;;  %v638_v17 = vld [vmem:[#allocation2 + $0x2b0] sm:$0xff]  ;;  %v635_v18 = vld [vmem:[#allocation2 + $0x298] sm:$0xff] }
 0x1e7   : > { %1428 = vmatpush1.bf16.msra.mxu0 %v2414_v24  ;;  %v582_v24 = vld [vmem:[#allocation2 + $0xf0] sm:$0xff] }
 0x1e8   : > { %1429 = vmatprep.subr.bf16.mxu0 %v2423_v26  ;;  %v583_v26 = vld [vmem:[#allocation2 + $0xf8] sm:$0xff]  ;;  %v2345_v29 = vcombine.high %v578_v23, %v582_v24  ;;  %v2344_v35 = vcombine.low %v578_v23, %v582_v24  ;;  %v642_v24 = vld [vmem:[#allocation2 + $0x2d0] sm:$0xff] }
 0x1e9   : > { %v2347_v30 = vcombine.high %v579_v25, %v583_v26 }
 0x1eb   : > { %1430 = vmatpush1.bf16.msra.mxu0 %v2422_v32  ;;  %v590_v32 = vld [vmem:[#allocation2 + $0x130] sm:$0xff] }
 0x1ec   : > { %1431 = vmatprep.subr.bf16.mxu0 %v2431_v34  ;;  %v591_v34 = vld [vmem:[#allocation2 + $0x138] sm:$0xff] }
 0x1ed   : > { %v2355_v38 = vcombine.high %v587_v33, %v591_v34 }
 0x1ef   : > { %1432 = vmatpush1.bf16.msra.mxu0 %v2430_v36  ;;  %v2346_v36 = vcombine.low %v579_v25, %v583_v26  ;;  %v646_v25 = vld [vmem:[#allocation2 + $0x2f0] sm:$0xff]  ;;  %v643_v26 = vld [vmem:[#allocation2 + $0x2d8] sm:$0xff] }
 0x1f0   : > { %1433 = vmatprep.subr.bf16.mxu0 %v2439_v45  ;;  %v2361_v45 = vcombine.high %v594_v39, %v598_v40  ;;  %v658_v40 = vld [vmem:[#allocation2 + $0x350] sm:$0xff] }
 0x1f3   : > { %1434 = vmatpush1.bf16.msra.mxu0 %v2438_v44  ;;  %v2354_v44 = vcombine.low %v587_v33, %v591_v34  ;;  %v654_v33 = vld [vmem:[#allocation2 + $0x330] sm:$0xff]  ;;  %v651_v34 = vld [vmem:[#allocation2 + $0x318] sm:$0xff] }
 0x1f4   : > { %1485 = vmatprep.subr.bf16.mxu0 %v2323_v59 }
 0x289   : > { %v526_v43 = vpop.f32.mrb[0].mxu0 }
 0x28a   : > { %v527_v47 = vadd.f32 %v2308_v37, %v526_v43  ;;  %v2620_v48 = vpop.f32.mrb[1].mxu0  ;;  %v2353_v37 = vcombine.high %v586_v31, %v590_v32  ;;  %v2352_v43 = vcombine.low %v586_v31, %v590_v32  ;;  %v650_v32 = vld [vmem:[#allocation2 + $0x310] sm:$0xff] }
 0x28b   : > { %v529_v49 = vpop.f32.mrb[2].mxu0  ;;  %v606_v48 = vld [vmem:[#allocation2 + $0x1b0] sm:$0xff] }
 0x28c   : > { %v532_v53 = vmax.f32 %v527_v47, 0.0  ;;  %v2621_v54 = vpop.f32.mrb[3].mxu0  ;;  %v602_v47 = vld [vmem:[#allocation2 + $0x190] sm:$0xff]  ;;  %v603_v49 = vld [vmem:[#allocation2 + $0x198] sm:$0xff] }
 0x28d   : > { %v2371_v54 = vcombine.high %v603_v49, %v607_v50  ;;  %v2368_v59 = vcombine.low %v602_v47, %v606_v48 }
 0x28e   : > { %v534_v60 = vrot.slane %v532_v53, 1 }
 0x290   : > { %v536_v61 = vmax.f32 %v532_v53, %v534_v60  ;;  %v2369_v53 = vcombine.high %v602_v47, %v606_v48  ;;  %v2370_v60 = vcombine.low %v603_v49, %v607_v50  ;;  %v666_v48 = vld [vmem:[#allocation2 + $0x390] sm:$0xff]  ;;  %v667_v50 = vld [vmem:[#allocation2 + $0x398] sm:$0xff] }
 0x291   : > { %v670_v49 = vld [vmem:[#allocation2 + $0x3b0] sm:$0xff] }
 0x292   : > { %v538_v62 = vrot.slane %v536_v61, 2  ;;  %v544_v63 = vrot.slane %v536_v61, 6  ;;  %v542_v2 = vrot.slane %v536_v61, 4 }
 0x294   : > { %v2685_v0 = vpack.i.bf16 %v538_v62, %v544_v63  ;;  %v618_v63 = vld [vmem:[#allocation2 + $0x210] sm:$0xff] }
 0x296   : > { %2686 = vrot.lane.b32.xlu0 %v2685_v0, %s2865_s14  ;;  %v622_v0 = vld [vmem:[#allocation2 + $0x230] sm:$0xff]  ;;  %s2792_s14 = sshll.u32 %s2866_s13, 4  ;;  %s2793_s14 = int_to_ptr.vmem [resolvable:$false] %s2792_s14 }
 0x297   : > { %v2385_v5 = vcombine.high %v618_v63, %v622_v0  ;;  %s2794_s23 = scalar_lea.vmem %s2793_s14, 32  ;;  %p2795_p2 = scmp.lt.s32.totalorder %s3278_s25, %s2793_s14 }
 0x298   : > { %p2796_p3 = scmp.lt.s32.totalorder %s2794_s23, %s2788_s29 }
 0x29a   : > { %p2797_p4 = por %p2796_p3, %p2795_p2 }
 0x29c   : > { %p2798_p7 = pnand %p2797_p4, %p2791_p12 }
 0x308   : > { %v2687_v1 = vpop.permute.xlu0 %2686 }
 0x309   : > { %v2689_v3 = vunpack.i.h.bf16 %v2687_v1  ;;  %v2688_v4 = vunpack.i.l.bf16 %v2687_v1  ;;  %v619_v1 = vld [vmem:[#allocation2 + $0x218] sm:$0xff] }
 0x30b   : > { %v548_v6 = vsel %vm430_vm4, %v536_v61, %v2689_v3  ;;  %v549_v7 = vsel %vm430_vm4, %v542_v2, %v2688_v4  ;;  %v2377_v61 = vcombine.high %v610_v55, %v614_v56  ;;  %v623_v2 = vld [vmem:[#allocation2 + $0x238] sm:$0xff]  ;;  %v2376_v3 = vcombine.low %v610_v55, %v614_v56  ;;  %v674_v56 = vld [vmem:[#allocation2 + $0x3d0] sm:$0xff] }
 0x30c   : > { %v3047_v11 = vpack.c.bf16 %v548_v6, %v548_v6  ;;  %v551_v12 = vpack.c.bf16 %v549_v7, %v549_v7  ;;  %v2387_v6 = vcombine.high %v619_v1, %v623_v2  ;;  %v626_v7 = vld [vmem:[#allocation2 + $0x250] sm:$0xff]  ;;  %v2386_v13 = vcombine.low %v619_v1, %v623_v2  ;;  %v2696_v2 = vld [vmem:[%s3325_s7 + $0x40] sm:$0xff]  }
 0x30e   : > { %1394 = vmatprep.mubr.bf16.mxu1 %v551_v12  ;;  %1435 = vmatprep.mubr.bf16.mxu0 %v551_v12 }
 0x30f   : > { %1395 = vmatmul.mubr.bf16.vlgmr.msra.gmra.mrb[0].mxu1 %v3047_v11  ;;  %1436 = vmatmul.mubr.bf16.vlgmr.msra.gmra.mrb[4].mxu0 %v3047_v11 }
 0x310   : > { %1445 = vmatpush1.bf16.msra.mxu1 %v2320_v57  ;;  %1486 = vmatpush1.bf16.msra.mxu0 %v2322_v58  ;;  %v611_v57 = vld [vmem:[#allocation2 + $0x1d8] sm:$0xff] }
 0x311   : > { %1476 = vmatprep.mubr.bf16.mxu1 %v551_v12  ;;  %1517 = vmatprep.mubr.bf16.mxu0 %v551_v12  ;;  %v615_v58 = vld [vmem:[#allocation2 + $0x1f8] sm:$0xff]  ;;  %v2384_v12 = vcombine.low %v618_v63, %v622_v0 }
 0x312   : > { %1446 = vmatprep.subr.bf16.mxu1 %v2329_v14  ;;  %1487 = vmatprep.subr.bf16.mxu0 %v2331_v15  ;;  %v2379_v62 = vcombine.high %v611_v57, %v615_v58  ;;  %v2378_v4 = vcombine.low %v611_v57, %v615_v58  ;;  %v2393_v14 = vcombine.high %v626_v7, %v630_v8  ;;  %v678_v57 = vld [vmem:[#allocation2 + $0x3f0] sm:$0xff]  ;;  %v675_v58 = vld [vmem:[#allocation2 + $0x3d8] sm:$0xff] }
 0x313   : > { %v2395_v15 = vcombine.high %v627_v9, %v631_v10  ;;  %v2440_v0 = vcombine.low %v674_v56, %v678_v57 }
 0x314   : > { %1447 = vmatpush1.bf16.msra.mxu1 %v2328_v19  ;;  %1488 = vmatpush1.bf16.msra.mxu0 %v2330_v20  ;;  %v639_v19 = vld [vmem:[#allocation2 + $0x2b8] sm:$0xff]  ;;  %v2392_v20 = vcombine.low %v626_v7, %v630_v8  ;;  %v2701_v7 = vld [vmem:[%s3325_s7 + $0xc8] sm:$0xff]  }
 0x315   : > { %1448 = vmatprep.subr.bf16.mxu1 %v2337_v21  ;;  %1489 = vmatprep.subr.bf16.mxu0 %v2339_v22  ;;  %v2394_v21 = vcombine.low %v627_v9, %v631_v10  ;;  %v2401_v22 = vcombine.high %v634_v16, %v638_v17  ;;  %v2403_v23 = vcombine.high %v635_v18, %v639_v19  ;;  %v2702_v8 = vld [vmem:[%s3325_s7 + $0x8] sm:$0xff]   ;;  %v2704_v10 = vld [vmem:[%s3325_s7 + $0x50] sm:$0xff]  }
 0x316   : > { %v2703_v9 = vld [vmem:[%s3325_s7 + $0x88] sm:$0xff]  }
 0x318   : > { %1449 = vmatpush1.bf16.msra.mxu1 %v2336_v27  ;;  %1490 = vmatpush1.bf16.msra.mxu0 %v2338_v28  ;;  %v647_v27 = vld [vmem:[#allocation2 + $0x2f8] sm:$0xff]  ;;  %v2400_v28 = vcombine.low %v634_v16, %v638_v17 }
 0x319   : > { %1450 = vmatprep.subr.bf16.mxu1 %v2345_v29  ;;  %1491 = vmatprep.subr.bf16.mxu0 %v2347_v30  ;;  %v2402_v29 = vcombine.low %v635_v18, %v639_v19  ;;  %v2409_v30 = vcombine.high %v642_v24, %v646_v25  ;;  %v2411_v31 = vcombine.high %v643_v26, %v647_v27  ;;  %v2710_v16 = vld [vmem:[%s3325_s7 + $0x18] sm:$0xff]   ;;  %v2712_v18 = vld [vmem:[%s3325_s7 + $0x60] sm:$0xff]  }
 0x31a   : > { %v2711_v17 = vld [vmem:[%s3325_s7 + $0x98] sm:$0xff]   ;;  %v2713_v19 = vld [vmem:[%s3325_s7 + $0xe0] sm:$0xff]  }
 0x31c   : > { %1451 = vmatpush1.bf16.msra.mxu1 %v2344_v35  ;;  %1492 = vmatpush1.bf16.msra.mxu0 %v2346_v36  ;;  %v655_v35 = vld [vmem:[#allocation2 + $0x338] sm:$0xff]  ;;  %v2408_v36 = vcombine.low %v642_v24, %v646_v25  ;;  %v2718_v24 = vld [vmem:[%s3325_s7 + $0x28] sm:$0xff]  }
 0x31d   : > { %1452 = vmatprep.subr.bf16.mxu1 %v2353_v37  ;;  %1493 = vmatprep.subr.bf16.mxu0 %v2355_v38  ;;  %v2410_v37 = vcombine.low %v643_v26, %v647_v27  ;;  %v2417_v38 = vcombine.high %v650_v32, %v654_v33  ;;  %v2419_v39 = vcombine.high %v651_v34, %v655_v35  ;;  %v2719_v25 = vld [vmem:[%s3325_s7 + $0xa8] sm:$0xff]   ;;  %v2720_v26 = vld [vmem:[%s3325_s7 + $0x70] sm:$0xff]  }
 0x31e   : > { %v2721_v27 = vld [vmem:[%s3325_s7 + $0xf0] sm:$0xff]  }
 0x320   : > { %1453 = vmatpush1.bf16.msra.mxu1 %v2352_v43  ;;  %1494 = vmatpush1.bf16.msra.mxu0 %v2354_v44  ;;  %v663_v43 = vld [vmem:[#allocation2 + $0x378] sm:$0xff]  ;;  %v2416_v44 = vcombine.low %v650_v32, %v654_v33 }
 0x321   : > { %1454 = vmatprep.subr.bf16.mxu1 %v2361_v45  ;;  %1495 = vmatprep.subr.bf16.mxu0 %v2363_v46  ;;  %v2418_v45 = vcombine.low %v651_v34, %v655_v35  ;;  %v2425_v46 = vcombine.high %v658_v40, %v662_v41  ;;  %v2427_v47 = vcombine.high %v659_v42, %v663_v43  ;;  %v2726_v32 = vld [vmem:[%s3325_s7 + $0x38] sm:$0xff]   ;;  %v2728_v34 = vld [vmem:[%s3325_s7 + $0x140] sm:$0xff]  }
 0x322   : > { %v2727_v33 = vld [vmem:[%s3325_s7 + $0xb8] sm:$0xff]   ;;  %v2729_v35 = vld [vmem:[%s3325_s7 + $0x1c0] sm:$0xff]  }
 0x324   : > { %1455 = vmatpush1.bf16.msra.mxu1 %v2360_v51  ;;  %1496 = vmatpush1.bf16.msra.mxu0 %v2362_v52  ;;  %v671_v51 = vld [vmem:[#allocation2 + $0x3b8] sm:$0xff]  ;;  %v2424_v52 = vcombine.low %v658_v40, %v662_v41  ;;  %v3162_v40 = vld [vmem:[%s3324_s6] sm:$0xff] }
 0x325   : > { %1456 = vmatprep.subr.bf16.mxu1 %v2369_v53  ;;  %1497 = vmatprep.subr.bf16.mxu0 %v2371_v54  ;;  %v2426_v53 = vcombine.low %v659_v42, %v663_v43  ;;  %v2433_v54 = vcombine.high %v666_v48, %v670_v49  ;;  %v2435_v55 = vcombine.high %v667_v50, %v671_v51 }
 0x328   : > { %1457 = vmatpush1.bf16.msra.mxu1 %v2368_v59  ;;  %1498 = vmatpush1.bf16.msra.mxu0 %v2370_v60  ;;  %v679_v59 = vld [vmem:[#allocation2 + $0x3f8] sm:$0xff]  ;;  %v2432_v60 = vcombine.low %v666_v48, %v670_v49 }
 0x329   : > { %1458 = vmatprep.subr.bf16.mxu1 %v2377_v61  ;;  %1499 = vmatprep.subr.bf16.mxu0 %v2379_v62  ;;  %v2434_v61 = vcombine.low %v667_v50, %v671_v51  ;;  %v2441_v62 = vcombine.high %v674_v56, %v678_v57  ;;  %v2443_v63 = vcombine.high %v675_v58, %v679_v59 }
 0x32a   : > { %v2442_v1 = vcombine.low %v675_v58, %v679_v59 }
 0x32c   : > { %1459 = vmatpush1.bf16.msra.mxu1 %v2376_v3  ;;  %1500 = vmatpush1.bf16.msra.mxu0 %v2378_v4  ;;  %v2697_v3 = vld [vmem:[%s3325_s7 + $0xc0] sm:$0xff]  }
 0x32d   : > { %1460 = vmatprep.subr.bf16.mxu1 %v2385_v5  ;;  %1501 = vmatprep.subr.bf16.mxu0 %v2387_v6  ;;  %v2698_v4 = vld [vmem:[%s3325_s7] sm:$0xff]   ;;  %v2700_v6 = vld [vmem:[%s3325_s7 + $0x48] sm:$0xff]  }
 0x32e   : > { %v2699_v5 = vld [vmem:[%s3325_s7 + $0x80] sm:$0xff]  }
 0x330   : > { %1461 = vmatpush1.bf16.msra.mxu1 %v2384_v12  ;;  %1502 = vmatpush1.bf16.msra.mxu0 %v2386_v13  ;;  %v2706_v12 = vld [vmem:[%s3325_s7 + $0x10] sm:$0xff]  }
 0x331   : > { %1462 = vmatprep.subr.bf16.mxu1 %v2393_v14  ;;  %1503 = vmatprep.subr.bf16.mxu0 %v2395_v15  ;;  %v2707_v13 = vld [vmem:[%s3325_s7 + $0x90] sm:$0xff]   ;;  %v2708_v14 = vld [vmem:[%s3325_s7 + $0x58] sm:$0xff]  }
 0x332   : > { %v2709_v15 = vld [vmem:[%s3325_s7 + $0xd8] sm:$0xff]  }
 0x334   : > { %1463 = vmatpush1.bf16.msra.mxu1 %v2392_v20  ;;  %1504 = vmatpush1.bf16.msra.mxu0 %v2394_v21  ;;  %v2714_v20 = vld [vmem:[%s3325_s7 + $0x20] sm:$0xff]  }
 0x335   : > { %1464 = vmatprep.subr.bf16.mxu1 %v2401_v22  ;;  %1505 = vmatprep.subr.bf16.mxu0 %v2403_v23  ;;  %v2715_v21 = vld [vmem:[%s3325_s7 + $0xa0] sm:$0xff]   ;;  %v2716_v22 = vld [vmem:[%s3325_s7 + $0x68] sm:$0xff]  }
 0x336   : > { %v2717_v23 = vld [vmem:[%s3325_s7 + $0xe8] sm:$0xff]  }
 0x338   : > { %1465 = vmatpush1.bf16.msra.mxu1 %v2400_v28  ;;  %1506 = vmatpush1.bf16.msra.mxu0 %v2402_v29  ;;  %v2722_v28 = vld [vmem:[%s3325_s7 + $0x30] sm:$0xff]  }
 0x339   : > { %1466 = vmatprep.subr.bf16.mxu1 %v2409_v30  ;;  %1507 = vmatprep.subr.bf16.mxu0 %v2411_v31  ;;  %v2723_v29 = vld [vmem:[%s3325_s7 + $0xb0] sm:$0xff]   ;;  %v2724_v30 = vld [vmem:[%s3325_s7 + $0x78] sm:$0xff]  }
 0x33a   : > { %v2725_v31 = vld [vmem:[%s3325_s7 + $0xf8] sm:$0xff]  }
 0x33c   : > { %1467 = vmatpush1.bf16.msra.mxu1 %v2408_v36  ;;  %1508 = vmatpush1.bf16.msra.mxu0 %v2410_v37  ;;  %v1322_v36 = vlaneseq }
 0x33d   : > { %1468 = vmatprep.subr.bf16.mxu1 %v2417_v38  ;;  %1509 = vmatprep.subr.bf16.mxu0 %v2419_v39 }
 0x33e   : > { %v3155_v37 = vshrl.u32 %v1322_v36, 7 }
 0x340   : > { %1469 = vmatpush1.bf16.msra.mxu1 %v2416_v44  ;;  %1510 = vmatpush1.bf16.msra.mxu0 %v2418_v45  ;;  %v1324_v38 = vsub.s32 0, %v3155_v37  ;;  %v1332_v39 = vsub.s32 2, %v3155_v37  ;;  %v1328_v41 = vsub.s32 1, %v3155_v37  ;;  %v1336_v42 = vsub.s32 3, %v3155_v37 }
 0x341   : > { %1470 = vmatprep.subr.bf16.mxu1 %v2425_v46  ;;  %1511 = vmatprep.subr.bf16.mxu0 %v2427_v47  ;;  %v1352_v36 = vsub.s32 7, %v3155_v37 }
 0x342   : > { %v1325_v43 = vrot.slane %v3162_v40, %v1324_v38  ;;  %v1333_v44 = vrot.slane %v3162_v40, %v1332_v39  ;;  %v1329_v45 = vrot.slane %v3162_v40, %v1328_v41  ;;  %v1337_v46 = vrot.slane %v3162_v40, %v1336_v42 }
 0x343   : > { %v1353_v42 = vrot.slane %v3162_v40, %v1352_v36 }
 0x344   : > { %1471 = vmatpush1.bf16.msra.mxu1 %v2424_v52  ;;  %1512 = vmatpush1.bf16.msra.mxu0 %v2426_v53 }
 0x345   : > { %1472 = vmatprep.subr.bf16.mxu1 %v2433_v54  ;;  %1513 = vmatprep.subr.bf16.mxu0 %v2435_v55 }
 0x348   : > { %1473 = vmatpush1.bf16.msra.mxu1 %v2432_v60  ;;  %1514 = vmatpush1.bf16.msra.mxu0 %v2434_v61 }
 0x349   : > { %1474 = vmatprep.subr.bf16.mxu1 %v2441_v62  ;;  %1515 = vmatprep.subr.bf16.mxu0 %v2443_v63 }
 0x34c   : > { %1475 = vmatpush1.bf16.msra.mxu1 %v2440_v0  ;;  %1516 = vmatpush1.bf16.msra.mxu0 %v2442_v1  ;;  %v2730_v1 = vld [vmem:[%s3325_s7 + $0x100] sm:$0xff]  }
 0x34d   : > { %2518 = vmatprep.subr.bf16.mxu1 %v2696_v2  ;;  %2540 = vmatprep.subr.bf16.mxu0 %v2697_v3  ;;  %v2731_v2 = vld [vmem:[%s3325_s7 + $0x180] sm:$0xff]  }
 0x34f   : > { %1477 = vmatmul.mubr.bf16.vlgmr.msra.gmra.mrb[4].mxu1 %v3047_v11  ;;  %1518 = vmatmul.mubr.bf16.vlgmr.msra.gmra.mrb[8].mxu0 %v3047_v11  ;;  %v2705_v11 = vld [vmem:[%s3325_s7 + $0xd0] sm:$0xff]  }
 0x350   : > { %2519 = vmatpush3.bf16.msra.mxu1 %v2698_v4  ;;  %2541 = vmatpush3.bf16.msra.mxu0 %v2699_v5  ;;  %v2732_v5 = vld [vmem:[%s3325_s7 + $0x148] sm:$0xff]  }
 0x351   : > { %2520 = vmatprep.subr.bf16.mxu1 %v2700_v6  ;;  %2542 = vmatprep.subr.bf16.mxu0 %v2701_v7  ;;  %v2733_v6 = vld [vmem:[%s3325_s7 + $0x1c8] sm:$0xff]  }
 0x352   : > { %v2734_v7 = vld [vmem:[%s3325_s7 + $0x108] sm:$0xff]  }
 0x354   : > { %2521 = vmatpush3.bf16.msra.mxu1 %v2702_v8  ;;  %2543 = vmatpush3.bf16.msra.mxu0 %v2703_v9  ;;  %v2735_v8 = vld [vmem:[%s3325_s7 + $0x188] sm:$0xff]   ;;  %v2736_v9 = vld [vmem:[%s3325_s7 + $0x150] sm:$0xff]  }
 0x355   : > { %2522 = vmatprep.subr.bf16.mxu1 %v2704_v10  ;;  %2544 = vmatprep.subr.bf16.mxu0 %v2705_v11  ;;  %v2737_v10 = vld [vmem:[%s3325_s7 + $0x1d0] sm:$0xff]  }
 0x356   : > { %v2738_v11 = vld [vmem:[%s3325_s7 + $0x110] sm:$0xff]  }
 0x358   : > { %2523 = vmatpush3.bf16.msra.mxu1 %v2706_v12  ;;  %2545 = vmatpush3.bf16.msra.mxu0 %v2707_v13  ;;  %v2739_v12 = vld [vmem:[%s3325_s7 + $0x190] sm:$0xff]   ;;  %v2740_v13 = vld [vmem:[%s3325_s7 + $0x158] sm:$0xff]  }
 0x359   : > { %2524 = vmatprep.subr.bf16.mxu1 %v2708_v14  ;;  %2546 = vmatprep.subr.bf16.mxu0 %v2709_v15  ;;  %v2741_v14 = vld [vmem:[%s3325_s7 + $0x1d8] sm:$0xff]  }
 0x35a   : > { %v2742_v15 = vld [vmem:[%s3325_s7 + $0x118] sm:$0xff]  }
 0x35c   : > { %2525 = vmatpush3.bf16.msra.mxu1 %v2710_v16  ;;  %2547 = vmatpush3.bf16.msra.mxu0 %v2711_v17  ;;  %v2743_v16 = vld [vmem:[%s3325_s7 + $0x198] sm:$0xff]   ;;  %v2744_v17 = vld [vmem:[%s3325_s7 + $0x160] sm:$0xff]  }
 0x35d   : > { %2526 = vmatprep.subr.bf16.mxu1 %v2712_v18  ;;  %2548 = vmatprep.subr.bf16.mxu0 %v2713_v19  ;;  %v2745_v18 = vld [vmem:[%s3325_s7 + $0x1e0] sm:$0xff]  }
 0x35e   : > { %v2746_v19 = vld [vmem:[%s3325_s7 + $0x120] sm:$0xff]  }
 0x360   : > { %2527 = vmatpush3.bf16.msra.mxu1 %v2714_v20  ;;  %2549 = vmatpush3.bf16.msra.mxu0 %v2715_v21  ;;  %v2747_v20 = vld [vmem:[%s3325_s7 + $0x1a0] sm:$0xff]   ;;  %v2748_v21 = vld [vmem:[%s3325_s7 + $0x168] sm:$0xff]  }
 0x361   : > { %2528 = vmatprep.subr.bf16.mxu1 %v2716_v22  ;;  %2550 = vmatprep.subr.bf16.mxu0 %v2717_v23  ;;  %v2749_v22 = vld [vmem:[%s3325_s7 + $0x1e8] sm:$0xff]  }
 0x362   : > { %v2750_v23 = vld [vmem:[%s3325_s7 + $0x128] sm:$0xff]  }
 0x364   : > { %2529 = vmatpush3.bf16.msra.mxu1 %v2718_v24  ;;  %2551 = vmatpush3.bf16.msra.mxu0 %v2719_v25  ;;  %v2751_v24 = vld [vmem:[%s3325_s7 + $0x1a8] sm:$0xff]   ;;  %v2752_v25 = vld [vmem:[%s3325_s7 + $0x170] sm:$0xff]  }
 0x365   : > { %2530 = vmatprep.subr.bf16.mxu1 %v2720_v26  ;;  %2552 = vmatprep.subr.bf16.mxu0 %v2721_v27  ;;  %v2753_v26 = vld [vmem:[%s3325_s7 + $0x1f0] sm:$0xff]  }
 0x366   : > { %v2754_v27 = vld [vmem:[%s3325_s7 + $0x130] sm:$0xff]  }
 0x368   : > { %2531 = vmatpush3.bf16.msra.mxu1 %v2722_v28  ;;  %2553 = vmatpush3.bf16.msra.mxu0 %v2723_v29  ;;  %v2755_v28 = vld [vmem:[%s3325_s7 + $0x1b0] sm:$0xff]   ;;  %v2756_v29 = vld [vmem:[%s3325_s7 + $0x178] sm:$0xff]  }
 0x369   : > { %2532 = vmatprep.subr.bf16.mxu1 %v2724_v30  ;;  %2554 = vmatprep.subr.bf16.mxu0 %v2725_v31  ;;  %v2757_v30 = vld [vmem:[%s3325_s7 + $0x1f8] sm:$0xff]  }
 0x36a   : > { %v2758_v31 = vld [vmem:[%s3325_s7 + $0x138] sm:$0xff]  }
 0x36c   : > { %2533 = vmatpush3.bf16.msra.mxu1 %v2726_v32  ;;  %2555 = vmatpush3.bf16.msra.mxu0 %v2727_v33  ;;  %v2759_v32 = vld [vmem:[%s3325_s7 + $0x1b8] sm:$0xff]   ;;  %v1340_v33 = vsub.s32 4, %v3155_v37 }
 0x36d   : > { %2562 = vmatprep.subr.bf16.mxu1 %v2728_v34  ;;  %2584 = vmatprep.subr.bf16.mxu0 %v2729_v35  ;;  %v1348_v34 = vsub.s32 6, %v3155_v37  ;;  %v1344_v35 = vsub.s32 5, %v3155_v37 }
 0x36e   : > { %v1341_v38 = vrot.slane %v3162_v40, %v1340_v33 }
 0x36f   : > { %v1349_v39 = vrot.slane %v3162_v40, %v1348_v34  ;;  %v1345_v41 = vrot.slane %v3162_v40, %v1344_v35 }
 0x3e2   : > { %v1396_v47 = vpop.f32.mrb[0].mxu1  ;;  %v1437_v48 = vpop.f32.mrb[4].mxu0 }
 0x3e3   : > { %v1397_v49 = vadd.f32 %v1396_v47, %v1325_v43  ;;  %v1438_v50 = vadd.f32 %v1437_v48, %v1333_v44  ;;  %v1398_v51 = vpop.f32.mrb[1].mxu1  ;;  %v1439_v52 = vpop.f32.mrb[5].mxu0 }
 0x3e4   : > { %v1399_v53 = vadd.f32 %v1398_v51, %v1329_v45  ;;  %v1440_v54 = vadd.f32 %v1439_v52, %v1337_v46  ;;  %v1400_v55 = vpop.f32.mrb[2].mxu1  ;;  %v1441_v56 = vpop.f32.mrb[6].mxu0 }
 0x3e5   : > { %v1526_v57 = vmax.f32 %v1397_v49, 0.0  ;;  %v1528_v58 = vmax.f32 %v1438_v50, 0.0  ;;  %v1401_v59 = vpop.f32.mrb[3].mxu1  ;;  %v1442_v60 = vpop.f32.mrb[7].mxu0 }
 0x3e6   : > { %v1527_v61 = vmax.f32 %v1399_v53, 0.0  ;;  %v1529_v62 = vmax.f32 %v1440_v54, 0.0 }
 0x3e7   : > { %v1534_v3 = vpack.c.bf16 %v1526_v57, %v1526_v57  ;;  %v1536_v4 = vpack.c.bf16 %v1528_v58, %v1528_v58 }
 0x3e8   : > { %v1535_v63 = vpack.c.bf16 %v1527_v61, %v1527_v61  ;;  %v1537_v0 = vpack.c.bf16 %v1529_v62, %v1529_v62 }
 0x3ea   : > { %2087 = vmatprep.mubr.bf16.mxu1 %v1535_v63  ;;  %2127 = vmatprep.mubr.bf16.mxu0 %v1537_v0  ;;  %v1670_v63 = vld [vmem:[%s3326_s8] sm:$0x1] }
 0x3eb   : > { %2088 = vmatmul.mubr.bf16.vlgmr.msra.gmra.mrb[8].mxu1 %v1534_v3  ;;  %2128 = vmatmul.mubr.bf16.vlgmr.msra.gmra.mrb[12].mxu0 %v1536_v4 }
 0x3ec   : > { %2563 = vmatpush3.bf16.msra.mxu1 %v2730_v1  ;;  %2585 = vmatpush3.bf16.msra.mxu0 %v2731_v2 }
 0x3ed   : > { %2564 = vmatprep.subr.bf16.mxu1 %v2732_v5  ;;  %2586 = vmatprep.subr.bf16.mxu0 %v2733_v6 }
 0x3f0   : > { %2565 = vmatpush3.bf16.msra.mxu1 %v2734_v7  ;;  %2587 = vmatpush3.bf16.msra.mxu0 %v2735_v8 }
 0x3f1   : > { %2566 = vmatprep.subr.bf16.mxu1 %v2736_v9  ;;  %2588 = vmatprep.subr.bf16.mxu0 %v2737_v10 }
 0x3f4   : > { %2567 = vmatpush3.bf16.msra.mxu1 %v2738_v11  ;;  %2589 = vmatpush3.bf16.msra.mxu0 %v2739_v12 }
 0x3f5   : > { %2568 = vmatprep.subr.bf16.mxu1 %v2740_v13  ;;  %2590 = vmatprep.subr.bf16.mxu0 %v2741_v14 }
 0x3f8   : > { %2569 = vmatpush3.bf16.msra.mxu1 %v2742_v15  ;;  %2591 = vmatpush3.bf16.msra.mxu0 %v2743_v16 }
 0x3f9   : > { %2570 = vmatprep.subr.bf16.mxu1 %v2744_v17  ;;  %2592 = vmatprep.subr.bf16.mxu0 %v2745_v18 }
 0x3fc   : > { %2571 = vmatpush3.bf16.msra.mxu1 %v2746_v19  ;;  %2593 = vmatpush3.bf16.msra.mxu0 %v2747_v20 }
 0x3fd   : > { %2572 = vmatprep.subr.bf16.mxu1 %v2748_v21  ;;  %2594 = vmatprep.subr.bf16.mxu0 %v2749_v22 }
 0x400   : > { %2573 = vmatpush3.bf16.msra.mxu1 %v2750_v23  ;;  %2595 = vmatpush3.bf16.msra.mxu0 %v2751_v24 }
 0x401   : > { %2574 = vmatprep.subr.bf16.mxu1 %v2752_v25  ;;  %2596 = vmatprep.subr.bf16.mxu0 %v2753_v26 }
 0x404   : > { %2575 = vmatpush3.bf16.msra.mxu1 %v2754_v27  ;;  %2597 = vmatpush3.bf16.msra.mxu0 %v2755_v28 }
 0x405   : > { %2576 = vmatprep.subr.bf16.mxu1 %v2756_v29  ;;  %2598 = vmatprep.subr.bf16.mxu0 %v2757_v30 }
 0x408   : > { %2577 = vmatpush3.bf16.msra.mxu1 %v2758_v31  ;;  %2599 = vmatpush3.bf16.msra.mxu0 %v2759_v32 }
 0x422   : > { %v1478_v43 = vpop.f32.mrb[4].mxu1  ;;  %v1519_v44 = vpop.f32.mrb[8].mxu0 }
 0x423   : > { %v1479_v45 = vadd.f32 %v1478_v43, %v1341_v38  ;;  %v1520_v46 = vadd.f32 %v1519_v44, %v1349_v39  ;;  %v1480_v47 = vpop.f32.mrb[5].mxu1  ;;  %v1521_v48 = vpop.f32.mrb[9].mxu0 }
 0x424   : > { %v1481_v49 = vadd.f32 %v1480_v47, %v1345_v41  ;;  %v1522_v50 = vadd.f32 %v1521_v48, %v1353_v42  ;;  %v1482_v51 = vpop.f32.mrb[6].mxu1  ;;  %v1523_v52 = vpop.f32.mrb[10].mxu0 }
 0x425   : > { %v1530_v53 = vmax.f32 %v1479_v45, 0.0  ;;  %v1532_v37 = vmax.f32 %v1520_v46, 0.0  ;;  %v1483_v54 = vpop.f32.mrb[7].mxu1  ;;  %v1524_v55 = vpop.f32.mrb[11].mxu0 }
 0x426   : > { %v1531_v56 = vmax.f32 %v1481_v49, 0.0  ;;  %v1533_v57 = vmax.f32 %v1522_v50, 0.0 }
 0x427   : > { %v1538_v60 = vpack.c.bf16 %v1530_v53, %v1530_v53  ;;  %v1540_v40 = vpack.c.bf16 %v1532_v37, %v1532_v37 }
 0x428   : > { %v1539_v58 = vpack.c.bf16 %v1531_v56, %v1531_v56  ;;  %v1541_v59 = vpack.c.bf16 %v1533_v57, %v1533_v57 }
 0x42a   : > { %2167 = vmatprep.mubr.bf16.mxu1 %v1539_v58  ;;  %2207 = vmatprep.mubr.bf16.mxu0 %v1541_v59 }
 0x42b   : > { %2168 = vmatmul.mubr.bf16.vlgmr.msra.gmra.mrb[12].mxu1 %v1538_v60  ;;  %2208 = vmatmul.mubr.bf16.vlgmr.msra.gmra.mrb[16].mxu0 %v1540_v40 }
 0x4be   : > { %v2534_v61 = vpop.f32.mrb[8].mxu1  ;;  %v2556_v62 = vpop.f32.mrb[12].mxu0 }
 0x4bf   : > { %v2535_v0 = vpop.f32.mrb[9].mxu1  ;;  %v2557_v1 = vpop.f32.mrb[13].mxu0 }
 0x4c0   : > { %v2536_v2 = vadd.f32 %v2535_v0, %v2534_v61  ;;  %v2558_v3 = vadd.f32 %v2557_v1, %v2556_v62  ;;  %v2537_v4 = vpop.f32.mrb[10].mxu1  ;;  %v2559_v5 = vpop.f32.mrb[14].mxu0 }
 0x4c1   : > { %v2538_v6 = vpop.f32.mrb[11].mxu1  ;;  %v2560_v7 = vpop.f32.mrb[15].mxu0 }
 0x4c2   : > { %v2090_v8 = vadd.f32 %v2536_v2, %v1670_v63 }
 0x4c4   : > { %v2130_v9 = vadd.f32 %v2558_v3, %v2090_v8 }
 0x4fe   : > { %v2578_v10 = vpop.f32.mrb[12].mxu1  ;;  %v2600_v11 = vpop.f32.mrb[16].mxu0 }
 0x4ff   : > { %v2579_v12 = vpop.f32.mrb[13].mxu1  ;;  %v2601_v13 = vpop.f32.mrb[17].mxu0 }
 0x500   : > { %v2580_v14 = vadd.f32 %v2579_v12, %v2578_v10  ;;  %v2602_v15 = vadd.f32 %v2601_v13, %v2600_v11  ;;  %v2581_v16 = vpop.f32.mrb[14].mxu1  ;;  %v2603_v17 = vpop.f32.mrb[18].mxu0 }
 0x501   : > { %v2582_v18 = vpop.f32.mrb[15].mxu1  ;;  %v2604_v19 = vpop.f32.mrb[19].mxu0 }
 0x502   : > { %v2170_v20 = vadd.f32 %v2580_v14, %v2130_v9 }
 0x504   : > { %v2210_v21 = vadd.f32 %v2602_v15, %v2170_v20 }
 0x506   : > { %2216 = vst.msk [vmem:[%s337_s22] sm:$0x1] %vm2215_vm6, %v2210_v21 }
 0x507   : > { %2801 = shalt.err (!%p2798_p7)
}
 0x508   : > { %s2802_s21 = scalar_lea.hbm %s3276_s24, 16  ;;  %s2806_s22 = scalar_lea.hbm %s3327_s9, 32 }
 0x509   : > { %p2803_p8 = scmp.ne.s32.totalorder %s3276_s24, %s2802_s21  ;;  %p2807_p1 = scmp.lt.u32.totalorder %s3276_s24, %s3327_s9 }
 0x50a   : > { %p2808_p0 = scmp.lt.u32.totalorder %s2806_s22, %s2802_s21  ;;  %p2810_p6 = scmp.lt.u32.totalorder %s2802_s21, %s3276_s24 }
 0x50b   : > { %p2804_p11 = pnand %p2803_p8, %p3338_p9 }
 0x50c   : > { %p2809_p5 = por %p2808_p0, %p2807_p1 }
 0x50d   : > { %p2805_p13 = pneg %p2804_p11 }
 0x50e   : > { %p2811_p10 = por %p2810_p6, %p2809_p5 }
 0x510   : > { %p2812_p12 = pnand %p2811_p10, %p2805_p13 }
 0x512   : > { %2815 = shalt.err (!%p2812_p12)
}
 0x513   : > { %2626 = dma.vmem_to_hbm [thread:$0]  (%p3338_p9), %s3278_s25, 16, %s3276_s24, %s2218_s27  }
 0x514 PF: > { %p2638_p2 = scmp.ge.s32.totalorder %s2854_s12, 2  ;;  %s2242_s29 = sand.u32 1, %s2842_s30  }
 0x515   : > { %p3339_p3 = scmp.ne.s32.totalorder %s3332_s20, 0  ;;  %s2243_s13 = scalar_lea.sflag [#allocation4], %s2242_s29 }
 0x517   : > { %p2633_p4 = pnand %p2638_p2, %p3339_p3 }
 0x519   : > { %2837 = dma.done.wait (!%p2633_p4), %s2243_s13, 16  }
 0x51a   : > { %2839 = vsyncadd (!%p2633_p4), %s2243_s13, 4294967280  ;;  %p20_p7 = scmp.ge.s32.totalorder %s2942_s15, 4   ;;  %s3340_s30 = smov %s2846_s10 }
 0x51b   : > { %s3341_s10 = smov %s2850_s11  ;;  %s3342_s11 = smov %s2953_s18 }
 0x51c   : > { %s3343_s12 = smov %s2942_s15  ;;  %22 = sbr.rel (!%p20_p7) target bundleno = 4 (0x4), region = 96 }
 0x523   :  { %2247 = vsyncpa [#allocation3], 1 }
 0x524   :  { %2249 = vsyncpa [#allocation3 + $0x1], 1 }
 0x525   :  { %2250 = vsyncpa [#allocation4], 1 }
 0x526   :  { %2252 = vsyncpa [#allocation4 + $0x1], 1 }

</bundles_post_ra>
